<compile_context>
chip_gen: v6e
topology: v6e:2x2x1
jax: 0.10.0
libtpu: 0.0.40
codegen_flags: <defaults>
</compile_context>

<pallas_src>
import jax
import jax.numpy as jnp
import numpy as np
from jax.experimental import pallas as pl
from jax.experimental.pallas import tpu as pltpu

SEQ = 8          # sequence length (small example)
IN = 768         # input_size
H1 = 256         # fc hidden
H2 = 128         # output_features (LSTM input size)
NC = 16          # num_classes == LSTM hidden size
FC_BLK = 128     # fc output slab width (grid = H1 // FC_BLK = 2 steps)


def lstm_model_kernel(x_ref, wfc_ref, bfc_ref, wfc1_ref, bfc1_ref,
                      wih_ref, bi_ref, whh_ref, out_ref, h1_ref):
    pid = pl.program_id(0)

    # ---- Stage 1 (every grid step): one 128-wide slab of fc -> relu --------
    # x is already bf16; W_fc slab is bf16; accumulate f32 on the MXU.
    h1_half = jnp.dot(x_ref[...], wfc_ref[...],
                      preferred_element_type=jnp.float32) + bfc_ref[...]
    h1_half = jnp.maximum(h1_half, 0.0)

    @pl.when(pid == 0)
    def _():
        h1_ref[:, 0:FC_BLK] = h1_half

    @pl.when(pid == 1)
    def _():
        h1_ref[:, FC_BLK:2 * FC_BLK] = h1_half

    # ---- Stage 2 (last grid step): fc1 -> relu -> LSTM -> LogSoftmax -------
    @pl.when(pid == pl.num_programs(0) - 1)
    def _():
        h1 = h1_ref[...]
        h2 = jnp.dot(h1.astype(jnp.bfloat16), wfc1_ref[...],
                     preferred_element_type=jnp.float32) + bfc1_ref[...]
        h2 = jnp.maximum(h2, 0.0)

        # LSTM input projection for all timesteps at once (stays in vregs).
        # gx[t] = h2[t] @ W_ih^T + (b_ih + b_hh)   (g columns pre-scaled x2)
        gx = jnp.dot(h2.astype(jnp.bfloat16), wih_ref[...],
                     preferred_element_type=jnp.float32) + bi_ref[...]

        whh = whh_ref[...]  # (NC, 4*NC), transposed, g columns pre-scaled x2

        # Fully unrolled recurrence (PyTorch gate order: i, f, g, o).
        h = jnp.zeros((1, NC), jnp.float32)
        c = jnp.zeros((1, NC), jnp.float32)
        hs = []
        for t in range(SEQ):  # SEQ static -> full unroll, static slices
            gates = gx[t:t + 1, :] + jnp.dot(h, whh,
                                             preferred_element_type=jnp.float32)
            sig = jax.nn.sigmoid(gates)          # one EUP push covers i,f,g,o
            i = sig[:, 0 * NC:1 * NC]
            f = sig[:, 1 * NC:2 * NC]
            g = 2.0 * sig[:, 2 * NC:3 * NC] - 1.0  # tanh(x) = 2*sigmoid(2x)-1
            o = sig[:, 3 * NC:4 * NC]
            c = f * c + i * g
            h = o * jnp.tanh(c)
            hs.append(h)

        hs = jnp.concatenate(hs, axis=0)  # (SEQ, NC), stays in vregs

        # LogSoftmax over the class dimension (dim=1), single store.
        m = jnp.max(hs, axis=1, keepdims=True)
        z = hs - m
        lse = jnp.log(jnp.sum(jnp.exp(z), axis=1, keepdims=True))
        out_ref[...] = z - lse


def _cost_estimate():
    flops = (2 * SEQ * IN * H1          # fc
             + 2 * SEQ * H1 * H2        # fc1
             + 2 * SEQ * H2 * 4 * NC    # LSTM input projection
             + 2 * SEQ * NC * 4 * NC)   # LSTM recurrent matmuls
    transcendentals = SEQ * (4 * NC + NC) + SEQ * (NC + 1)  # sigmoid/tanh/exp/log
    bytes_accessed = (SEQ * IN * 2                          # x (bf16)
                      + IN * H1 * 2 + H1 * 4                # fc  (bf16 W, f32 b)
                      + H1 * H2 * 2 + H2 * 4                # fc1 (bf16 W, f32 b)
                      + H2 * 4 * NC * 2 + 4 * NC * 4        # W_ih bf16, bias f32
                      + NC * 4 * NC * 4                     # W_hh f32
                      + SEQ * NC * 4)                       # output f32
    return pl.CostEstimate(flops=flops, transcendentals=transcendentals,
                           bytes_accessed=bytes_accessed)


def lstm_model_forward(x, params):
    (wfc_t, bfc, wfc1_t, bfc1, wih_t, b_comb, whh_t) = params
    x_bf = x.astype(jnp.bfloat16)  # cast in wrapper: halves x DMA, no in-kernel cast
    n_slabs = H1 // FC_BLK  # = 2

    return pl.pallas_call(
        lstm_model_kernel,
        out_shape=jax.ShapeDtypeStruct((SEQ, NC), jnp.float32),
        grid=(n_slabs,),
        in_specs=[
            pl.BlockSpec((SEQ, IN), lambda i: (0, 0)),        # x (bf16)
            pl.BlockSpec((IN, FC_BLK), lambda i: (0, i)),     # W_fc slab (bf16)
            pl.BlockSpec((1, FC_BLK), lambda i: (0, i)),      # b_fc slab (f32)
            pl.BlockSpec((H1, H2), lambda i: (0, 0)),         # W_fc1 (bf16)
            pl.BlockSpec((1, H2), lambda i: (0, 0)),          # b_fc1 (f32)
            pl.BlockSpec((H2, 4 * NC), lambda i: (0, 0)),     # W_ih^T (bf16, g x2)
            pl.BlockSpec((1, 4 * NC), lambda i: (0, 0)),      # b_ih+b_hh (f32, g x2)
            pl.BlockSpec((NC, 4 * NC), lambda i: (0, 0)),     # W_hh^T (f32, g x2)
        ],
        out_specs=pl.BlockSpec((SEQ, NC), lambda i: (0, 0)),
        scratch_shapes=[pltpu.VMEM((SEQ, H1), jnp.float32)],  # staged h1
        compiler_params=pltpu.CompilerParams(
            dimension_semantics=("arbitrary",)),
        cost_estimate=_cost_estimate(),
    )(x_bf, wfc_t, bfc, wfc1_t, bfc1, wih_t, b_comb, whh_t)


def init_params(key):
    ks = jax.random.split(key, 8)

    def unif(k, shape, bound):
        return jax.random.uniform(k, shape, jnp.float32, -bound, bound)

    # nn.Linear(768, 256)
    w_fc = unif(ks[0], (H1, IN), 1.0 / np.sqrt(IN))
    b_fc = unif(ks[1], (H1,), 1.0 / np.sqrt(IN))
    # nn.Linear(256, 128)
    w_fc1 = unif(ks[2], (H2, H1), 1.0 / np.sqrt(H1))
    b_fc1 = unif(ks[3], (H2,), 1.0 / np.sqrt(H1))
    # nn.LSTM(input_size=128, hidden_size=16)
    k_lstm = 1.0 / np.sqrt(NC)
    w_ih = unif(ks[4], (4 * NC, H2), k_lstm)
    w_hh = unif(ks[5], (4 * NC, NC), k_lstm)
    b_ih = unif(ks[6], (4 * NC,), k_lstm)
    b_hh = unif(ks[7], (4 * NC,), k_lstm)

    # Pre-scale the g-gate rows by 2 (exact power-of-two scaling, no extra
    # rounding) so the kernel can compute tanh(x) = 2*sigmoid(2x) - 1 without
    # any extra in-kernel scaling of the gate pre-activation.
    gate_scale = jnp.ones((4 * NC, 1), jnp.float32).at[2 * NC:3 * NC].set(2.0)

    # Pass transposed weights / 2-D biases so the kernel avoids in-kernel
    # transposes; the large weights (and W_ih) are stored bf16 (DMA halved),
    # MXU accumulates f32.  W_hh / biases / recurrence stay f32.
    params = (
        w_fc.T.astype(jnp.bfloat16),                       # (768, 256) bf16
        b_fc.reshape(1, H1),                               # (1, 256)   f32
        w_fc1.T.astype(jnp.bfloat16),                      # (256, 128) bf16
        b_fc1.reshape(1, H2),                              # (1, 128)   f32
        (w_ih * gate_scale).T.astype(jnp.bfloat16),        # (128, 64)  bf16
        ((b_ih + b_hh) * gate_scale[:, 0]).reshape(1, 4 * NC),  # (1, 64) f32
        (w_hh * gate_scale).T,                             # (16, 64)   f32
    )
    raw = (w_fc, b_fc, w_fc1, b_fc1, w_ih, w_hh, b_ih, b_hh)
    return params, raw


def reference_forward(x, raw):
    """Pure-JAX reference matching PyTorch semantics (bf16 MLP / W_ih weights,
    the kernel's accepted precision trade-off; LSTM recurrence + softmax f32,
    standard tanh gate)."""
    w_fc, b_fc, w_fc1, b_fc1, w_ih, w_hh, b_ih, b_hh = raw
    xb = x.astype(jnp.bfloat16)
    h = jnp.dot(xb, w_fc.T.astype(jnp.bfloat16),
                preferred_element_type=jnp.float32) + b_fc
    h = jnp.maximum(h, 0.0)
    h = jnp.dot(h.astype(jnp.bfloat16), w_fc1.T.astype(jnp.bfloat16),
                preferred_element_type=jnp.float32) + b_fc1
    h = jnp.maximum(h, 0.0)
    gx = jnp.dot(h.astype(jnp.bfloat16), w_ih.T.astype(jnp.bfloat16),
                 preferred_element_type=jnp.float32) + (b_ih + b_hh)

    def step(carry, g_t):
        hh, cc = carry
        gates = g_t + hh @ w_hh.T
        i = jax.nn.sigmoid(gates[0 * NC:1 * NC])
        f = jax.nn.sigmoid(gates[1 * NC:2 * NC])
        g = jnp.tanh(gates[2 * NC:3 * NC])
        o = jax.nn.sigmoid(gates[3 * NC:4 * NC])
        cc = f * cc + i * g
        hh = o * jnp.tanh(cc)
        return (hh, cc), hh

    (_, _), hs = jax.lax.scan(step, (jnp.zeros(NC), jnp.zeros(NC)), gx)
    return jax.nn.log_softmax(hs, axis=1)


if __name__ == "__main__":
    key = jax.random.PRNGKey(0)
    kx, kp = jax.random.split(key)
    x = jax.random.normal(kx, (SEQ, IN), jnp.float32)

    params, raw = init_params(kp)

    out = lstm_model_forward(x, params)
    out = jax.block_until_ready(out)

    ref = reference_forward(x, raw)
    np.testing.assert_allclose(np.asarray(out), np.asarray(ref),
                               rtol=5e-4, atol=5e-4)
    print("KERNEL_OK")
</pallas_src>

<mosaic_0001>
module attributes {stable_mosaic.version = 11 : i64} {
  func.func @lstm_model_kernel(%arg0: i32, %arg1: memref<8x768xbf16, #tpu.memory_space<vmem>>, %arg2: memref<768x128xbf16, #tpu.memory_space<vmem>>, %arg3: memref<1x128xf32, #tpu.memory_space<vmem>>, %arg4: memref<256x128xbf16, #tpu.memory_space<vmem>>, %arg5: memref<1x128xf32, #tpu.memory_space<vmem>>, %arg6: memref<128x64xbf16, #tpu.memory_space<vmem>>, %arg7: memref<1x64xf32, #tpu.memory_space<vmem>>, %arg8: memref<16x64xf32, #tpu.memory_space<vmem>>, %arg9: memref<8x16xf32, #tpu.memory_space<vmem>>, %arg10: memref<8x256xf32, #tpu.memory_space<vmem>>) attributes {dimension_semantics = [#tpu.dimension_semantics<arbitrary>], iteration_bounds = array<i64: 2>, scalar_prefetch = 0 : i64, scratch_operands = 1 : i64, tpu.core_type = #tpu.core_type<tc>, window_params = [{pipeline_mode = #tpu.pipeline_mode<synchronous>, transform_indices = @transform_0, window_bounds = array<i64: 8, 768>}, {transform_indices = @transform_1, window_bounds = array<i64: 768, 128>}, {transform_indices = @transform_2, window_bounds = array<i64: 1, 128>}, {pipeline_mode = #tpu.pipeline_mode<synchronous>, transform_indices = @transform_3, window_bounds = array<i64: 256, 128>}, {pipeline_mode = #tpu.pipeline_mode<synchronous>, transform_indices = @transform_4, window_bounds = array<i64: 1, 128>}, {pipeline_mode = #tpu.pipeline_mode<synchronous>, transform_indices = @transform_5, window_bounds = array<i64: 128, 64>}, {pipeline_mode = #tpu.pipeline_mode<synchronous>, transform_indices = @transform_6, window_bounds = array<i64: 1, 64>}, {pipeline_mode = #tpu.pipeline_mode<synchronous>, transform_indices = @transform_7, window_bounds = array<i64: 16, 64>}, {pipeline_mode = #tpu.pipeline_mode<synchronous>, transform_indices = @transform_8, window_bounds = array<i64: 8, 16>}]} {
    %c0 = arith.constant 0 : index
    %c0_0 = arith.constant 0 : index
    %0 = vector.load %arg1[%c0, %c0_0] : memref<8x768xbf16, #tpu.memory_space<vmem>>, vector<8x768xbf16>
    %c0_1 = arith.constant 0 : index
    %c0_2 = arith.constant 0 : index
    %1 = vector.load %arg2[%c0_1, %c0_2] : memref<768x128xbf16, #tpu.memory_space<vmem>>, vector<768x128xbf16>
    %cst = arith.constant dense<0.000000e+00> : vector<8x128xf32>
    %2 = tpu.matmul %0, %1, %cst {dimension_numbers = #tpu.dot_dimension_numbers<[1], [0], [0], [1], [0, 0, 1, 1], [], []>} : vector<8x768xbf16>, vector<768x128xbf16>, vector<8x128xf32> -> vector<8x128xf32>
    %c0_3 = arith.constant 0 : index
    %c0_4 = arith.constant 0 : index
    %3 = vector.load %arg3[%c0_3, %c0_4] : memref<1x128xf32, #tpu.memory_space<vmem>>, vector<1x128xf32>
    %4 = vector.broadcast %3 : vector<1x128xf32> to vector<8x128xf32>
    %5 = arith.addf %2, %4 : vector<8x128xf32>
    %cst_5 = arith.constant 0.000000e+00 : f32
    %6 = vector.broadcast %cst_5 : f32 to vector<8x128xf32>
    %7 = arith.maximumf %5, %6 : vector<8x128xf32>
    %c0_i32 = arith.constant 0 : i32
    %8 = arith.cmpi eq, %arg0, %c0_i32 : i32
    %9 = arith.extui %8 : i1 to i32
    %c0_i32_6 = arith.constant 0 : i32
    %10 = arith.cmpi ne, %9, %c0_i32_6 : i32
    scf.if %10 {
      %c0_10 = arith.constant 0 : index
      %c0_11 = arith.constant 0 : index
      %17 = vector.load %arg10[%c0_10, %c0_11] : memref<8x256xf32, #tpu.memory_space<vmem>>, vector<8x128xf32>
      tpu.vector_store %arg10[%c0_10, %c0_11], %7 {strides = array<i32>} : memref<8x256xf32, #tpu.memory_space<vmem>>, vector<8x128xf32>,
    } else {
    }
    %c1_i32 = arith.constant 1 : i32
    %11 = arith.cmpi eq, %arg0, %c1_i32 : i32
    %12 = arith.extui %11 : i1 to i32
    %c0_i32_7 = arith.constant 0 : i32
    %13 = arith.cmpi ne, %12, %c0_i32_7 : i32
    scf.if %13 {
      %c0_10 = arith.constant 0 : index
      %c128 = arith.constant 128 : index
      %17 = vector.load %arg10[%c0_10, %c128] : memref<8x256xf32, #tpu.memory_space<vmem>>, vector<8x128xf32>
      tpu.vector_store %arg10[%c0_10, %c128], %7 {strides = array<i32>} : memref<8x256xf32, #tpu.memory_space<vmem>>, vector<8x128xf32>,
    } else {
    }
    %c1_i32_8 = arith.constant 1 : i32
    %14 = arith.cmpi eq, %arg0, %c1_i32_8 : i32
    %15 = arith.extui %14 : i1 to i32
    %c0_i32_9 = arith.constant 0 : i32
    %16 = arith.cmpi ne, %15, %c0_i32_9 : i32
    scf.if %16 {
      %c0_10 = arith.constant 0 : index
      %c0_11 = arith.constant 0 : index
      %17 = vector.load %arg10[%c0_10, %c0_11] : memref<8x256xf32, #tpu.memory_space<vmem>>, vector<8x256xf32>
      %18 = arith.truncf %17 : vector<8x256xf32> to vector<8x256xbf16>
      %c0_12 = arith.constant 0 : index
      %c0_13 = arith.constant 0 : index
      %19 = vector.load %arg4[%c0_12, %c0_13] : memref<256x128xbf16, #tpu.memory_space<vmem>>, vector<256x128xbf16>
      %cst_14 = arith.constant dense<0.000000e+00> : vector<8x128xf32>
      %20 = tpu.matmul %18, %19, %cst_14 {dimension_numbers = #tpu.dot_dimension_numbers<[1], [0], [0], [1], [0, 0, 1, 1], [], []>} : vector<8x256xbf16>, vector<256x128xbf16>, vector<8x128xf32> -> vector<8x128xf32>
      %c0_15 = arith.constant 0 : index
      %c0_16 = arith.constant 0 : index
      %21 = vector.load %arg5[%c0_15, %c0_16] : memref<1x128xf32, #tpu.memory_space<vmem>>, vector<1x128xf32>
      %22 = vector.broadcast %21 : vector<1x128xf32> to vector<8x128xf32>
      %23 = arith.addf %20, %22 : vector<8x128xf32>
      %cst_17 = arith.constant 0.000000e+00 : f32
      %24 = vector.broadcast %cst_17 : f32 to vector<8x128xf32>
      %25 = arith.maximumf %23, %24 : vector<8x128xf32>
      %26 = arith.truncf %25 : vector<8x128xf32> to vector<8x128xbf16>
      %c0_18 = arith.constant 0 : index
      %c0_19 = arith.constant 0 : index
      %27 = vector.load %arg6[%c0_18, %c0_19] : memref<128x64xbf16, #tpu.memory_space<vmem>>, vector<128x64xbf16>
      %cst_20 = arith.constant dense<0.000000e+00> : vector<8x64xf32>
      %28 = tpu.matmul %26, %27, %cst_20 {dimension_numbers = #tpu.dot_dimension_numbers<[1], [0], [0], [1], [0, 0, 1, 1], [], []>} : vector<8x128xbf16>, vector<128x64xbf16>, vector<8x64xf32> -> vector<8x64xf32>
      %c0_21 = arith.constant 0 : index
      %c0_22 = arith.constant 0 : index
      %29 = vector.load %arg7[%c0_21, %c0_22] : memref<1x64xf32, #tpu.memory_space<vmem>>, vector<1x64xf32>
      %30 = vector.broadcast %29 : vector<1x64xf32> to vector<8x64xf32>
      %31 = arith.addf %28, %30 : vector<8x64xf32>
      %c0_23 = arith.constant 0 : index
      %c0_24 = arith.constant 0 : index
      %32 = vector.load %arg8[%c0_23, %c0_24] : memref<16x64xf32, #tpu.memory_space<vmem>>, vector<16x64xf32>
      %cst_25 = arith.constant 0.000000e+00 : f32
      %33 = vector.broadcast %cst_25 : f32 to vector<1x16xf32>
      %cst_26 = arith.constant 0.000000e+00 : f32
      %34 = vector.broadcast %cst_26 : f32 to vector<1x16xf32>
      %35 = vector.extract_strided_slice %31 {offsets = [0, 0], sizes = [1, 64], strides = [1, 1]} : vector<8x64xf32> to vector<1x64xf32>
      %cst_27 = arith.constant dense<0.000000e+00> : vector<1x64xf32>
      %36 = tpu.matmul %33, %32, %cst_27 {dimension_numbers = #tpu.dot_dimension_numbers<[1], [0], [0], [1], [0, 0, 1, 1], [], []>} : vector<1x16xf32>, vector<16x64xf32>, vector<1x64xf32> -> vector<1x64xf32>
      %37 = arith.addf %35, %36 : vector<1x64xf32>
      %38 = arith.negf %37 : vector<1x64xf32>
      %39 = math.exp %38 : vector<1x64xf32>
      %cst_28 = arith.constant 1.000000e+00 : f32
      %40 = vector.broadcast %cst_28 : f32 to vector<1x64xf32>
      %41 = arith.addf %40, %39 : vector<1x64xf32>
      %42 = arith.divf %40, %41 : vector<1x64xf32>
      %43 = vector.extract_strided_slice %42 {offsets = [0, 0], sizes = [1, 16], strides = [1, 1]} : vector<1x64xf32> to vector<1x16xf32>
      %44 = vector.extract_strided_slice %42 {offsets = [0, 16], sizes = [1, 16], strides = [1, 1]} : vector<1x64xf32> to vector<1x16xf32>
      %45 = vector.extract_strided_slice %42 {offsets = [0, 32], sizes = [1, 16], strides = [1, 1]} : vector<1x64xf32> to vector<1x16xf32>
      %cst_29 = arith.constant 2.000000e+00 : f32
      %46 = vector.broadcast %cst_29 : f32 to vector<1x16xf32>
      %47 = arith.mulf %46, %45 : vector<1x16xf32>
      %cst_30 = arith.constant 1.000000e+00 : f32
      %48 = vector.broadcast %cst_30 : f32 to vector<1x16xf32>
      %49 = arith.subf %47, %48 : vector<1x16xf32>
      %50 = vector.extract_strided_slice %42 {offsets = [0, 48], sizes = [1, 16], strides = [1, 1]} : vector<1x64xf32> to vector<1x16xf32>
      %51 = arith.mulf %44, %34 : vector<1x16xf32>
      %52 = arith.mulf %43, %49 : vector<1x16xf32>
      %53 = arith.addf %51, %52 : vector<1x16xf32>
      %54 = math.tanh %53 : vector<1x16xf32>
      %55 = arith.mulf %50, %54 : vector<1x16xf32>
      %56 = vector.extract_strided_slice %31 {offsets = [1, 0], sizes = [1, 64], strides = [1, 1]} : vector<8x64xf32> to vector<1x64xf32>
      %cst_31 = arith.constant dense<0.000000e+00> : vector<1x64xf32>
      %57 = tpu.matmul %55, %32, %cst_31 {dimension_numbers = #tpu.dot_dimension_numbers<[1], [0], [0], [1], [0, 0, 1, 1], [], []>} : vector<1x16xf32>, vector<16x64xf32>, vector<1x64xf32> -> vector<1x64xf32>
      %58 = arith.addf %56, %57 : vector<1x64xf32>
      %59 = arith.negf %58 : vector<1x64xf32>
      %60 = math.exp %59 : vector<1x64xf32>
      %cst_32 = arith.constant 1.000000e+00 : f32
      %61 = vector.broadcast %cst_32 : f32 to vector<1x64xf32>
      %62 = arith.addf %61, %60 : vector<1x64xf32>
      %63 = arith.divf %61, %62 : vector<1x64xf32>
      %64 = vector.extract_strided_slice %63 {offsets = [0, 0], sizes = [1, 16], strides = [1, 1]} : vector<1x64xf32> to vector<1x16xf32>
      %65 = vector.extract_strided_slice %63 {offsets = [0, 16], sizes = [1, 16], strides = [1, 1]} : vector<1x64xf32> to vector<1x16xf32>
      %66 = vector.extract_strided_slice %63 {offsets = [0, 32], sizes = [1, 16], strides = [1, 1]} : vector<1x64xf32> to vector<1x16xf32>
      %cst_33 = arith.constant 2.000000e+00 : f32
      %67 = vector.broadcast %cst_33 : f32 to vector<1x16xf32>
      %68 = arith.mulf %67, %66 : vector<1x16xf32>
      %cst_34 = arith.constant 1.000000e+00 : f32
      %69 = vector.broadcast %cst_34 : f32 to vector<1x16xf32>
      %70 = arith.subf %68, %69 : vector<1x16xf32>
      %71 = vector.extract_strided_slice %63 {offsets = [0, 48], sizes = [1, 16], strides = [1, 1]} : vector<1x64xf32> to vector<1x16xf32>
      %72 = arith.mulf %65, %53 : vector<1x16xf32>
      %73 = arith.mulf %64, %70 : vector<1x16xf32>
      %74 = arith.addf %72, %73 : vector<1x16xf32>
      %75 = math.tanh %74 : vector<1x16xf32>
      %76 = arith.mulf %71, %75 : vector<1x16xf32>
      %77 = vector.extract_strided_slice %31 {offsets = [2, 0], sizes = [1, 64], strides = [1, 1]} : vector<8x64xf32> to vector<1x64xf32>
      %cst_35 = arith.constant dense<0.000000e+00> : vector<1x64xf32>
      %78 = tpu.matmul %76, %32, %cst_35 {dimension_numbers = #tpu.dot_dimension_numbers<[1], [0], [0], [1], [0, 0, 1, 1], [], []>} : vector<1x16xf32>, vector<16x64xf32>, vector<1x64xf32> -> vector<1x64xf32>
      %79 = arith.addf %77, %78 : vector<1x64xf32>
      %80 = arith.negf %79 : vector<1x64xf32>
      %81 = math.exp %80 : vector<1x64xf32>
      %cst_36 = arith.constant 1.000000e+00 : f32
      %82 = vector.broadcast %cst_36 : f32 to vector<1x64xf32>
      %83 = arith.addf %82, %81 : vector<1x64xf32>
      %84 = arith.divf %82, %83 : vector<1x64xf32>
      %85 = vector.extract_strided_slice %84 {offsets = [0, 0], sizes = [1, 16], strides = [1, 1]} : vector<1x64xf32> to vector<1x16xf32>
      %86 = vector.extract_strided_slice %84 {offsets = [0, 16], sizes = [1, 16], strides = [1, 1]} : vector<1x64xf32> to vector<1x16xf32>
      %87 = vector.extract_strided_slice %84 {offsets = [0, 32], sizes = [1, 16], strides = [1, 1]} : vector<1x64xf32> to vector<1x16xf32>
      %cst_37 = arith.constant 2.000000e+00 : f32
      %88 = vector.broadcast %cst_37 : f32 to vector<1x16xf32>
      %89 = arith.mulf %88, %87 : vector<1x16xf32>
      %cst_38 = arith.constant 1.000000e+00 : f32
      %90 = vector.broadcast %cst_38 : f32 to vector<1x16xf32>
      %91 = arith.subf %89, %90 : vector<1x16xf32>
      %92 = vector.extract_strided_slice %84 {offsets = [0, 48], sizes = [1, 16], strides = [1, 1]} : vector<1x64xf32> to vector<1x16xf32>
      %93 = arith.mulf %86, %74 : vector<1x16xf32>
      %94 = arith.mulf %85, %91 : vector<1x16xf32>
      %95 = arith.addf %93, %94 : vector<1x16xf32>
      %96 = math.tanh %95 : vector<1x16xf32>
      %97 = arith.mulf %92, %96 : vector<1x16xf32>
      %98 = vector.extract_strided_slice %31 {offsets = [3, 0], sizes = [1, 64], strides = [1, 1]} : vector<8x64xf32> to vector<1x64xf32>
      %cst_39 = arith.constant dense<0.000000e+00> : vector<1x64xf32>
      %99 = tpu.matmul %97, %32, %cst_39 {dimension_numbers = #tpu.dot_dimension_numbers<[1], [0], [0], [1], [0, 0, 1, 1], [], []>} : vector<1x16xf32>, vector<16x64xf32>, vector<1x64xf32> -> vector<1x64xf32>
      %100 = arith.addf %98, %99 : vector<1x64xf32>
      %101 = arith.negf %100 : vector<1x64xf32>
      %102 = math.exp %101 : vector<1x64xf32>
      %cst_40 = arith.constant 1.000000e+00 : f32
      %103 = vector.broadcast %cst_40 : f32 to vector<1x64xf32>
      %104 = arith.addf %103, %102 : vector<1x64xf32>
      %105 = arith.divf %103, %104 : vector<1x64xf32>
      %106 = vector.extract_strided_slice %105 {offsets = [0, 0], sizes = [1, 16], strides = [1, 1]} : vector<1x64xf32> to vector<1x16xf32>
      %107 = vector.extract_strided_slice %105 {offsets = [0, 16], sizes = [1, 16], strides = [1, 1]} : vector<1x64xf32> to vector<1x16xf32>
      %108 = vector.extract_strided_slice %105 {offsets = [0, 32], sizes = [1, 16], strides = [1, 1]} : vector<1x64xf32> to vector<1x16xf32>
      %cst_41 = arith.constant 2.000000e+00 : f32
      %109 = vector.broadcast %cst_41 : f32 to vector<1x16xf32>
      %110 = arith.mulf %109, %108 : vector<1x16xf32>
      %cst_42 = arith.constant 1.000000e+00 : f32
      %111 = vector.broadcast %cst_42 : f32 to vector<1x16xf32>
      %112 = arith.subf %110, %111 : vector<1x16xf32>
      %113 = vector.extract_strided_slice %105 {offsets = [0, 48], sizes = [1, 16], strides = [1, 1]} : vector<1x64xf32> to vector<1x16xf32>
      %114 = arith.mulf %107, %95 : vector<1x16xf32>
      %115 = arith.mulf %106, %112 : vector<1x16xf32>
      %116 = arith.addf %114, %115 : vector<1x16xf32>
      %117 = math.tanh %116 : vector<1x16xf32>
      %118 = arith.mulf %113, %117 : vector<1x16xf32>
      %119 = vector.extract_strided_slice %31 {offsets = [4, 0], sizes = [1, 64], strides = [1, 1]} : vector<8x64xf32> to vector<1x64xf32>
      %cst_43 = arith.constant dense<0.000000e+00> : vector<1x64xf32>
      %120 = tpu.matmul %118, %32, %cst_43 {dimension_numbers = #tpu.dot_dimension_numbers<[1], [0], [0], [1], [0, 0, 1, 1], [], []>} : vector<1x16xf32>, vector<16x64xf32>, vector<1x64xf32> -> vector<1x64xf32>
      %121 = arith.addf %119, %120 : vector<1x64xf32>
      %122 = arith.negf %121 : vector<1x64xf32>
      %123 = math.exp %122 : vector<1x64xf32>
      %cst_44 = arith.constant 1.000000e+00 : f32
      %124 = vector.broadcast %cst_44 : f32 to vector<1x64xf32>
      %125 = arith.addf %124, %123 : vector<1x64xf32>
      %126 = arith.divf %124, %125 : vector<1x64xf32>
      %127 = vector.extract_strided_slice %126 {offsets = [0, 0], sizes = [1, 16], strides = [1, 1]} : vector<1x64xf32> to vector<1x16xf32>
      %128 = vector.extract_strided_slice %126 {offsets = [0, 16], sizes = [1, 16], strides = [1, 1]} : vector<1x64xf32> to vector<1x16xf32>
      %129 = vector.extract_strided_slice %126 {offsets = [0, 32], sizes = [1, 16], strides = [1, 1]} : vector<1x64xf32> to vector<1x16xf32>
      %cst_45 = arith.constant 2.000000e+00 : f32
      %130 = vector.broadcast %cst_45 : f32 to vector<1x16xf32>
      %131 = arith.mulf %130, %129 : vector<1x16xf32>
      %cst_46 = arith.constant 1.000000e+00 : f32
      %132 = vector.broadcast %cst_46 : f32 to vector<1x16xf32>
      %133 = arith.subf %131, %132 : vector<1x16xf32>
      %134 = vector.extract_strided_slice %126 {offsets = [0, 48], sizes = [1, 16], strides = [1, 1]} : vector<1x64xf32> to vector<1x16xf32>
      %135 = arith.mulf %128, %116 : vector<1x16xf32>
      %136 = arith.mulf %127, %133 : vector<1x16xf32>
      %137 = arith.addf %135, %136 : vector<1x16xf32>
      %138 = math.tanh %137 : vector<1x16xf32>
      %139 = arith.mulf %134, %138 : vector<1x16xf32>
      %140 = vector.extract_strided_slice %31 {offsets = [5, 0], sizes = [1, 64], strides = [1, 1]} : vector<8x64xf32> to vector<1x64xf32>
      %cst_47 = arith.constant dense<0.000000e+00> : vector<1x64xf32>
      %141 = tpu.matmul %139, %32, %cst_47 {dimension_numbers = #tpu.dot_dimension_numbers<[1], [0], [0], [1], [0, 0, 1, 1], [], []>} : vector<1x16xf32>, vector<16x64xf32>, vector<1x64xf32> -> vector<1x64xf32>
      %142 = arith.addf %140, %141 : vector<1x64xf32>
      %143 = arith.negf %142 : vector<1x64xf32>
      %144 = math.exp %143 : vector<1x64xf32>
      %cst_48 = arith.constant 1.000000e+00 : f32
      %145 = vector.broadcast %cst_48 : f32 to vector<1x64xf32>
      %146 = arith.addf %145, %144 : vector<1x64xf32>
      %147 = arith.divf %145, %146 : vector<1x64xf32>
      %148 = vector.extract_strided_slice %147 {offsets = [0, 0], sizes = [1, 16], strides = [1, 1]} : vector<1x64xf32> to vector<1x16xf32>
      %149 = vector.extract_strided_slice %147 {offsets = [0, 16], sizes = [1, 16], strides = [1, 1]} : vector<1x64xf32> to vector<1x16xf32>
      %150 = vector.extract_strided_slice %147 {offsets = [0, 32], sizes = [1, 16], strides = [1, 1]} : vector<1x64xf32> to vector<1x16xf32>
      %cst_49 = arith.constant 2.000000e+00 : f32
      %151 = vector.broadcast %cst_49 : f32 to vector<1x16xf32>
      %152 = arith.mulf %151, %150 : vector<1x16xf32>
      %cst_50 = arith.constant 1.000000e+00 : f32
      %153 = vector.broadcast %cst_50 : f32 to vector<1x16xf32>
      %154 = arith.subf %152, %153 : vector<1x16xf32>
      %155 = vector.extract_strided_slice %147 {offsets = [0, 48], sizes = [1, 16], strides = [1, 1]} : vector<1x64xf32> to vector<1x16xf32>
      %156 = arith.mulf %149, %137 : vector<1x16xf32>
      %157 = arith.mulf %148, %154 : vector<1x16xf32>
      %158 = arith.addf %156, %157 : vector<1x16xf32>
      %159 = math.tanh %158 : vector<1x16xf32>
      %160 = arith.mulf %155, %159 : vector<1x16xf32>
      %161 = vector.extract_strided_slice %31 {offsets = [6, 0], sizes = [1, 64], strides = [1, 1]} : vector<8x64xf32> to vector<1x64xf32>
      %cst_51 = arith.constant dense<0.000000e+00> : vector<1x64xf32>
      %162 = tpu.matmul %160, %32, %cst_51 {dimension_numbers = #tpu.dot_dimension_numbers<[1], [0], [0], [1], [0, 0, 1, 1], [], []>} : vector<1x16xf32>, vector<16x64xf32>, vector<1x64xf32> -> vector<1x64xf32>
      %163 = arith.addf %161, %162 : vector<1x64xf32>
      %164 = arith.negf %163 : vector<1x64xf32>
      %165 = math.exp %164 : vector<1x64xf32>
      %cst_52 = arith.constant 1.000000e+00 : f32
      %166 = vector.broadcast %cst_52 : f32 to vector<1x64xf32>
      %167 = arith.addf %166, %165 : vector<1x64xf32>
      %168 = arith.divf %166, %167 : vector<1x64xf32>
      %169 = vector.extract_strided_slice %168 {offsets = [0, 0], sizes = [1, 16], strides = [1, 1]} : vector<1x64xf32> to vector<1x16xf32>
      %170 = vector.extract_strided_slice %168 {offsets = [0, 16], sizes = [1, 16], strides = [1, 1]} : vector<1x64xf32> to vector<1x16xf32>
      %171 = vector.extract_strided_slice %168 {offsets = [0, 32], sizes = [1, 16], strides = [1, 1]} : vector<1x64xf32> to vector<1x16xf32>
      %cst_53 = arith.constant 2.000000e+00 : f32
      %172 = vector.broadcast %cst_53 : f32 to vector<1x16xf32>
      %173 = arith.mulf %172, %171 : vector<1x16xf32>
      %cst_54 = arith.constant 1.000000e+00 : f32
      %174 = vector.broadcast %cst_54 : f32 to vector<1x16xf32>
      %175 = arith.subf %173, %174 : vector<1x16xf32>
      %176 = vector.extract_strided_slice %168 {offsets = [0, 48], sizes = [1, 16], strides = [1, 1]} : vector<1x64xf32> to vector<1x16xf32>
      %177 = arith.mulf %170, %158 : vector<1x16xf32>
      %178 = arith.mulf %169, %175 : vector<1x16xf32>
      %179 = arith.addf %177, %178 : vector<1x16xf32>
      %180 = math.tanh %179 : vector<1x16xf32>
      %181 = arith.mulf %176, %180 : vector<1x16xf32>
      %182 = vector.extract_strided_slice %31 {offsets = [7, 0], sizes = [1, 64], strides = [1, 1]} : vector<8x64xf32> to vector<1x64xf32>
      %cst_55 = arith.constant dense<0.000000e+00> : vector<1x64xf32>
      %183 = tpu.matmul %181, %32, %cst_55 {dimension_numbers = #tpu.dot_dimension_numbers<[1], [0], [0], [1], [0, 0, 1, 1], [], []>} : vector<1x16xf32>, vector<16x64xf32>, vector<1x64xf32> -> vector<1x64xf32>
      %184 = arith.addf %182, %183 : vector<1x64xf32>
      %185 = arith.negf %184 : vector<1x64xf32>
      %186 = math.exp %185 : vector<1x64xf32>
      %cst_56 = arith.constant 1.000000e+00 : f32
      %187 = vector.broadcast %cst_56 : f32 to vector<1x64xf32>
      %188 = arith.addf %187, %186 : vector<1x64xf32>
      %189 = arith.divf %187, %188 : vector<1x64xf32>
      %190 = vector.extract_strided_slice %189 {offsets = [0, 0], sizes = [1, 16], strides = [1, 1]} : vector<1x64xf32> to vector<1x16xf32>
      %191 = vector.extract_strided_slice %189 {offsets = [0, 16], sizes = [1, 16], strides = [1, 1]} : vector<1x64xf32> to vector<1x16xf32>
      %192 = vector.extract_strided_slice %189 {offsets = [0, 32], sizes = [1, 16], strides = [1, 1]} : vector<1x64xf32> to vector<1x16xf32>
      %cst_57 = arith.constant 2.000000e+00 : f32
      %193 = vector.broadcast %cst_57 : f32 to vector<1x16xf32>
      %194 = arith.mulf %193, %192 : vector<1x16xf32>
      %cst_58 = arith.constant 1.000000e+00 : f32
      %195 = vector.broadcast %cst_58 : f32 to vector<1x16xf32>
      %196 = arith.subf %194, %195 : vector<1x16xf32>
      %197 = vector.extract_strided_slice %189 {offsets = [0, 48], sizes = [1, 16], strides = [1, 1]} : vector<1x64xf32> to vector<1x16xf32>
      %198 = arith.mulf %191, %179 : vector<1x16xf32>
      %199 = arith.mulf %190, %196 : vector<1x16xf32>
      %200 = arith.addf %198, %199 : vector<1x16xf32>
      %201 = math.tanh %200 : vector<1x16xf32>
      %202 = arith.mulf %197, %201 : vector<1x16xf32>
      %203 = tpu.concatenate %55, %76, %97, %118, %139, %160, %181, %202 in 0 : vector<1x16xf32>, vector<1x16xf32>, vector<1x16xf32>, vector<1x16xf32>, vector<1x16xf32>, vector<1x16xf32>, vector<1x16xf32>, vector<1x16xf32> -> vector<8x16xf32>
      %cst_59 = arith.constant dense<0xFF800000> : vector<8xf32>
      %204 = vector.multi_reduction <maximumf>, %203, %cst_59 [1] : vector<8x16xf32> to vector<8xf32>
      %205 = vector.shape_cast %204 : vector<8xf32> to vector<8x1xf32>
      %206 = vector.broadcast %205 : vector<8x1xf32> to vector<8x16xf32>
      %207 = arith.subf %203, %206 : vector<8x16xf32>
      %208 = math.exp %207 : vector<8x16xf32>
      %cst_60 = arith.constant dense<0.000000e+00> : vector<8xf32>
      %209 = vector.multi_reduction <add>, %208, %cst_60 [1] : vector<8x16xf32> to vector<8xf32>
      %210 = vector.shape_cast %209 : vector<8xf32> to vector<8x1xf32>
      %211 = math.log %210 : vector<8x1xf32>
      %212 = vector.broadcast %211 : vector<8x1xf32> to vector<8x16xf32>
      %213 = arith.subf %207, %212 : vector<8x16xf32>
      %c0_61 = arith.constant 0 : index
      %c0_62 = arith.constant 0 : index
      %214 = vector.load %arg9[%c0_61, %c0_62] : memref<8x16xf32, #tpu.memory_space<vmem>>, vector<8x16xf32>
      tpu.vector_store %arg9[%c0_61, %c0_62], %213 {strides = array<i32>} : memref<8x16xf32, #tpu.memory_space<vmem>>, vector<8x16xf32>,
    } else {
    }
    return
  }
  func.func @transform_0(%arg0: i32) -> (i32, i32) {
    %c0_i32 = arith.constant 0 : i32
    %c0_i32_0 = arith.constant 0 : i32
    %c0_i32_1 = arith.constant 0 : i32
    return %c0_i32, %c0_i32_0 : i32, i32
  }
  func.func @transform_1(%arg0: i32) -> (i32, i32) {
    %c0_i32 = arith.constant 0 : i32
    %c0_i32_0 = arith.constant 0 : i32
    return %c0_i32, %arg0 : i32, i32
  }
  func.func @transform_2(%arg0: i32) -> (i32, i32) {
    %c0_i32 = arith.constant 0 : i32
    %c0_i32_0 = arith.constant 0 : i32
    return %c0_i32, %arg0 : i32, i32
  }
  func.func @transform_3(%arg0: i32) -> (i32, i32) {
    %c0_i32 = arith.constant 0 : i32
    %c0_i32_0 = arith.constant 0 : i32
    %c0_i32_1 = arith.constant 0 : i32
    return %c0_i32, %c0_i32_0 : i32, i32
  }
  func.func @transform_4(%arg0: i32) -> (i32, i32) {
    %c0_i32 = arith.constant 0 : i32
    %c0_i32_0 = arith.constant 0 : i32
    %c0_i32_1 = arith.constant 0 : i32
    return %c0_i32, %c0_i32_0 : i32, i32
  }
  func.func @transform_5(%arg0: i32) -> (i32, i32) {
    %c0_i32 = arith.constant 0 : i32
    %c0_i32_0 = arith.constant 0 : i32
    %c0_i32_1 = arith.constant 0 : i32
    return %c0_i32, %c0_i32_0 : i32, i32
  }
  func.func @transform_6(%arg0: i32) -> (i32, i32) {
    %c0_i32 = arith.constant 0 : i32
    %c0_i32_0 = arith.constant 0 : i32
    %c0_i32_1 = arith.constant 0 : i32
    return %c0_i32, %c0_i32_0 : i32, i32
  }
  func.func @transform_7(%arg0: i32) -> (i32, i32) {
    %c0_i32 = arith.constant 0 : i32
    %c0_i32_0 = arith.constant 0 : i32
    %c0_i32_1 = arith.constant 0 : i32
    return %c0_i32, %c0_i32_0 : i32, i32
  }
  func.func @transform_8(%arg0: i32) -> (i32, i32) {
    %c0_i32 = arith.constant 0 : i32
    %c0_i32_0 = arith.constant 0 : i32
    %c0_i32_1 = arith.constant 0 : i32
    return %c0_i32, %c0_i32_0 : i32, i32
  }
}

</mosaic_0001>

<bundles_post_ra>
// kernel: tpu_custom_call.1
= control target key start
LH: loop header
LB: loop body
LE: loop exit
PB: predicated region body
PF: predicated region fallthrough
CT: control target
= control target key end

     0   :  { %13 = vsyncpa [#allocation4], 0  ;;  %s3206_s0 = inlined_call_operand.vmem [shape: bf16[8,768], index: 0, kind: input, shape index: {}]   ;;  %s3207_s1 = inlined_call_operand.hbm [shape: bf16[768,256], index: 1, kind: input, shape index: {}]   ;;  %s3208_s2 = inlined_call_operand.vmem [shape: f32[1,256], index: 2, kind: input, shape index: {}]   ;;  %s3209_s3 = inlined_call_operand.hbm [shape: bf16[256,128], index: 3, kind: input, shape index: {}]   ;;  %s3210_s4 = inlined_call_operand.vmem [shape: f32[1,128], index: 4, kind: input, shape index: {}]   ;;  %s3211_s5 = inlined_call_operand.vmem [shape: bf16[128,64], index: 5, kind: input, shape index: {}]   ;;  %s3212_s6 = inlined_call_operand.vmem [shape: f32[1,64], index: 6, kind: input, shape index: {}]   ;;  %s3213_s7 = inlined_call_operand.vmem [shape: f32[16,64], index: 7, kind: input, shape index: {}]   ;;  %s3214_s8 = inlined_call_operand.hbm [shape: f32[8,16], index: 8, kind: output, shape index: {}]  }
   0x1   :  { %15 = vsyncpa [#allocation4 + $0x1], 0 }
   0x2   :  { %16 = vsyncpa [#allocation7], 0 }
   0x3   :  { %17 = vsyncpa [#allocation5], 0  ;;  %s2839_s27 = smov 0   ;;  %s2841_s28 = smov 0  }
   0x4   :  { %s2843_s29 = smov 0   ;;  %s2845_s30 = smov 0  }
   0x5 LB: > { %s2858_s9 = sadd.s32 4294967295, %s2780_s30   ;;  %s2861_s10 = sadd.s32 1, %s2780_s30   ;;  %s2780_s30 = sphi %s2845_s30, %s3233_s30   ;;  %s2776_s29 = sphi %s2843_s29, %s3232_s29   ;;  %s2772_s28 = sphi %s2841_s28, %s3231_s28   ;;  %s2768_s27 = sphi %s2839_s27, %s3230_s27  }
   0x6   : > { %s48_s11 = ssub.s32 %s2780_s30, %s2861_s10  ;;  %s51_s12 = sadd.s32 1, %s2776_s29 }
   0x7   : > { %p49_p0 = scmp.eq.s32.totalorder %s48_s11, 0  ;;  %p58_p1 = scmp.ne.s32.totalorder %s2776_s29, %s2772_s28 }
   0x8   : > { %p59_p2 = scmp.eq.s32.totalorder %s2780_s30, 0  ;;  %p64_p3 = scmp.ne.s32.totalorder %s2772_s28, %s2768_s27 }
   0x9   : > { %s2871_s13 = scalar_select %p49_p0, %s2776_s29, %s51_s12  }
   0xa   : > { %p2873_p4 = por %p59_p2, %p58_p1  ;;  %p3215_p5 = scmp.eq.s32.totalorder %s2858_s9, 0 }
   0xb   : > { %3218 = sst [smem:[#allocation12_spill]] %s2871_s13  ;;  %p2149_p6 = scmp.ge.s32.totalorder %s2780_s30, 1 }
   0xc   : > { %p227_p7 = scmp.lt.s32.totalorder %s2780_s30, 3  ;;  %p2882_p8 = por %p3215_p5, %p64_p3 }
   0xd   : > { %s2782_s17 = smov [#allocation6]   ;;  %p2483_p13 = scmp.lt.s32.totalorder %s2780_s30, 2 }
   0xe   : > { %s3220_s15 = scalar_select %p2882_p8, 1, 0 }
   0xf   : > { %p2887_p10 = pnand %p2149_p6, %p227_p7  ;;  %s242_s18 = sshll.u32 %s2782_s17, 4  ;;  %s243_s18 = int_to_ptr.vmem [resolvable:$true] %s242_s18 }
  0x10   : > { %s268_s20 = sand.u32 1, %s2776_s29   ;;  %s2152_s21 = sshll.u32 %s2780_s30, 6 }
  0x11   : > { %s3221_s16 = scalar_select %p2887_p10, 1, 0 }
  0x12   : > { %p2474_p11 = pneg %p2887_p10  ;;  %p2904_p0 = pnand %p2483_p13, %p2873_p4 }
  0x13   : > { %s2671_s23 = scalar_lea.vmem %s243_s18, 2048  ;;  %p2679_p7 = scmp.lt.s32.totalorder %s243_s18, %s243_s18 }
  0x14   : > { %p2895_p12 = pnand %p2474_p11, %p3215_p5  ;;  %p2672_p2 = scmp.ne.s32.totalorder %s243_s18, %s2671_s23 }
  0x15   : > { %p2680_p11 = scmp.lt.s32.totalorder %s2671_s23, %s2671_s23 }
  0x16   : > { %p2662_p1 = pneg %p2895_p12 }
  0x17   : > { %p2681_p9 = por %p2680_p11, %p2679_p7 }
  0x18   : > { %p2674_p3 = pnand %p2672_p2, %p2662_p1 }
  0x1a   : > { %p2675_p6 = pneg %p2674_p3 }
  0x1c   : > { %p2682_p5 = pnand %p2681_p9, %p2675_p6 }
  0x1e   : > { %2685 = shalt.err (!%p2682_p5)
}
  0x1f   : > { %s2783_s24 = smov 64   ;;  %s2784_s25 = smov 4  }
  0x20   : > { %2477 = dma.hbm_to_vmem [thread:$0]  (!%p2895_p12), %s3209_s3, 2048, %s243_s18, [#allocation7], %s2783_s24, %s2783_s24, %s2784_s25  }
  0x21   : > { %s2462_s30 = smul.u32 384, %s268_s20  ;;  %s2921_s14 = scalar_lea.hbm %s3207_s1, %s2152_s21 }
  0x22   : > { %s2925_s19 = scalar_lea.sflag [#allocation4], %s268_s20  ;;  %s2686_s13 = scalar_lea.hbm %s2921_s14, 6144 }
  0x23   : > { %s272_s17 = scalar_lea.vmem [#allocation3], %s2462_s30  ;;  %p2687_p4 = scmp.ne.s32.totalorder %s2921_s14, %s2686_s13 }
  0x24   : > { %s278_s23 = sshll.u32 %s272_s17, 4  ;;  %p2688_p5 = pneg %p2904_p0  ;;  %s2923_s23 = int_to_ptr.vmem [resolvable:$true] %s278_s23 }
  0x25   : > { %s2691_s21 = scalar_lea.hbm %s3207_s1, 12288  ;;  %p2692_p13 = scmp.lt.s32.totalorder %s2921_s14, %s3207_s1 }
  0x26   : > { %p2689_p9 = pnand %p2688_p5, %p2687_p4  ;;  %p2693_p1 = scmp.lt.s32.totalorder %s2691_s21, %s2686_s13 }
  0x28   : > { %p2690_p12 = pneg %p2689_p9  ;;  %p2694_p2 = por %p2693_p1, %p2692_p13 }
  0x2a   : > { %p2695_p3 = pnand %p2694_p2, %p2690_p12 }
  0x2c   : > { %2698 = shalt.err (!%p2695_p3)
}
  0x2d   : > { %s2699_s20 = scalar_lea.vmem %s2923_s23, 6144  ;;  %s2785_s30 = smov [#allocation3]  }
  0x2e   : > { %p2700_p6 = scmp.ne.s32.totalorder %s2923_s23, %s2699_s20  ;;  %s2704_s12 = sshll.u32 %s2785_s30, 4  ;;  %s2705_s12 = int_to_ptr.vmem [resolvable:$false] %s2704_s12 }
  0x2f   : > { %s2706_s17 = scalar_lea.vmem %s2705_s12, 12288  ;;  %p2707_p4 = scmp.lt.s32.totalorder %s2923_s23, %s2705_s12 }
  0x30   : > { %p2702_p7 = pnand %p2700_p6, %p2688_p5  ;;  %p2708_p9 = scmp.lt.s32.totalorder %s2706_s17, %s2699_s20 }
  0x32   : > { %p2703_p11 = pneg %p2702_p7  ;;  %p2709_p8 = por %p2708_p9, %p2707_p4 }
  0x34   : > { %p2710_p10 = pnand %p2709_p8, %p2703_p11 }
  0x36   : > { %2713 = shalt.err (!%p2710_p10)
}
  0x37   : > { %s2786_s13 = smov 128   ;;  %p3224_p5 = scmp.ne.s32.totalorder %s3221_s16, 0 }
  0x38   : > { %2481 = dma.hbm_to_vmem [thread:$0]  (!%p2904_p0), %s2921_s14, 6144, %s2923_s23, %s2925_s19, %s2786_s13, %s2783_s24, %s2784_s25  }
  0x39   : > { %296 = sbr.rel (%p3224_p5) target bundleno = 6738 (0x1a52), region = 52  ;;  %s298_s18 = sand.u32 (!%p3224_p5), 1, %s2772_s28  }
  0x3a   : > { %s2463_s26 = smul.u32 (!%p3224_p5), 384, %s298_s18  ;;  %s299_s21 = scalar_lea.sflag (!%p3224_p5), [#allocation4], %s298_s18 }
  0x3b   : > { %p3225_p8 = scmp.ne.s32.totalorder (!%p3224_p5), %s3220_s15, 0 }
  0x3c   : > { %s2951_s27 = scalar_lea.vmem (!%p3224_p5), [#allocation3], %s2463_s26 }
  0x3e   : > { %2755 = dma.done.wait (%p3225_p8), %s299_s21, 6144  }
  0x3f   : > { %2757 = vsyncadd (%p3225_p8), %s299_s21, 4294961152  ;;  %p3226_p10 = scmp.eq.s32.totalorder %s2858_s9, 0 }
  0x41   : > { %2759 = dma.done.wait (%p3226_p10), [#allocation7], 2048   ;;  %p3227_p0 = pmov %p3226_p10 }
  0x42   : > { %v2530_v0 = vld [vmem:[%s2951_s27 + $0x78] sm:$0xff]   ;;  %v2534_v4 = vld [vmem:[%s2951_s27 + $0x70] sm:$0xff]   ;;  %v2538_v8 = vld [vmem:[%s2951_s27 + $0x68] sm:$0xff]   ;;  %p337_p12 = scmp.lt.s32.totalorder %s2858_s9, 1  ;;  %p3228_p13 = scmp.ne.s32.totalorder %s2858_s9, 0 }
  0x43   : > { %2761 = vsyncadd (%p3227_p0), [#allocation7], 4294965248  ;;  %v2531_v1 = vld [vmem:[%s2951_s27 + $0x38] sm:$0xff]   ;;  %2265 = vmatprep.subr.bf16.mxu0 %v2530_v0  ;;  %v2535_v5 = vld [vmem:[%s2951_s27 + $0x30] sm:$0xff]  }
  0x44   : > { %v2532_v2 = vld [vmem:[%s2951_s27 + $0xf8] sm:$0xff]   ;;  %2266 = vmatpush3.bf16.msra.mxu0 %v2531_v1  ;;  %v2536_v6 = vld [vmem:[%s2951_s27 + $0xf0] sm:$0xff]   ;;  %v2539_v9 = vld [vmem:[%s2951_s27 + $0x28] sm:$0xff]   ;;  %s338_s23 = scalar_select %p337_p12, %s2858_s9, 1 }
  0x45   : > { %v2533_v3 = vld [vmem:[%s2951_s27 + $0xb8] sm:$0xff]   ;;  %2287 = vmatprep.subr.bf16.mxu1 %v2532_v2  ;;  %2267 = vmatprep.subr.bf16.mxu0 %v2534_v4  ;;  %v2537_v7 = vld [vmem:[%s2951_s27 + $0xb0] sm:$0xff]   ;;  %v2540_v10 = vld [vmem:[%s2951_s27 + $0xe8] sm:$0xff]  }
  0x46   : > { %2288 = vmatpush3.bf16.msra.mxu1 %v2533_v3  ;;  %v2541_v11 = vld [vmem:[%s2951_s27 + $0xa8] sm:$0xff]   ;;  %v2542_v12 = vld [vmem:[%s2951_s27 + $0x60] sm:$0xff]   ;;  %v2546_v16 = vld [vmem:[%s2951_s27 + $0x58] sm:$0xff]   ;;  %s339_s20 = scalar_lea.vmem %s3208_s2, %s338_s23 }
  0x47   : > { %2289 = vmatprep.subr.bf16.mxu1 %v2536_v6  ;;  %v2543_v13 = vld [vmem:[%s2951_s27 + $0x20] sm:$0xff]   ;;  %v2547_v17 = vld [vmem:[%s2951_s27 + $0x18] sm:$0xff]   ;;  %v2550_v20 = vld [vmem:[%s2951_s27 + $0x50] sm:$0xff]  }
  0x48   : > { %2268 = vmatpush3.bf16.msra.mxu0 %v2535_v5  ;;  %v2544_v14 = vld [vmem:[%s2951_s27 + $0xe0] sm:$0xff]   ;;  %v2548_v18 = vld [vmem:[%s2951_s27 + $0xd8] sm:$0xff]   ;;  %v2551_v21 = vld [vmem:[%s2951_s27 + $0x10] sm:$0xff]  }
  0x49   : > { %2269 = vmatprep.subr.bf16.mxu0 %v2538_v8  ;;  %v2545_v15 = vld [vmem:[%s2951_s27 + $0xa0] sm:$0xff]   ;;  %v2549_v19 = vld [vmem:[%s2951_s27 + $0x98] sm:$0xff]   ;;  %v2552_v22 = vld [vmem:[%s2951_s27 + $0xd0] sm:$0xff]  }
  0x4a   : > { %2290 = vmatpush3.bf16.msra.mxu1 %v2537_v7  ;;  %v2553_v23 = vld [vmem:[%s2951_s27 + $0x90] sm:$0xff]   ;;  %v2554_v24 = vld [vmem:[%s2951_s27 + $0x48] sm:$0xff]   ;;  %v2558_v28 = vld [vmem:[%s2951_s27 + $0x40] sm:$0xff]  }
  0x4b   : > { %2291 = vmatprep.subr.bf16.mxu1 %v2540_v10  ;;  %v2555_v25 = vld [vmem:[%s2951_s27 + $0x8] sm:$0xff]   ;;  %v2559_v29 = vld [vmem:[%s2951_s27] sm:$0xff]   ;;  %v341_v31 = vld [vmem:[%s3206_s0] sm:$0xff] }
  0x4c   : > { %2270 = vmatpush3.bf16.msra.mxu0 %v2539_v9  ;;  %v2556_v26 = vld [vmem:[%s2951_s27 + $0xc8] sm:$0xff]   ;;  %v2560_v30 = vld [vmem:[%s2951_s27 + $0xc0] sm:$0xff]   ;;  %v2156_v32 = vcombine.low %v341_v31, %v341_v31  ;;  %v2157_v33 = vcombine.high %v341_v31, %v341_v31  ;;  %v2564_v35 = vld [vmem:[%s2951_s27 + $0x178] sm:$0xff]  }
  0x4d   : > { %2271 = vmatprep.subr.bf16.mxu0 %v2542_v12  ;;  %v2557_v27 = vld [vmem:[%s2951_s27 + $0x88] sm:$0xff]   ;;  %v2563_v34 = vld [vmem:[%s2951_s27 + $0x80] sm:$0xff]   ;;  %v342_v36 = vld [vmem:[%s3206_s0 + $0x8] sm:$0xff] }
  0x4e   : > { %2292 = vmatpush3.bf16.msra.mxu1 %v2541_v11  ;;  %788 = vmatprep.mubr.bf16.mxu0 %v2157_v33  ;;  %v2158_v37 = vcombine.low %v342_v36, %v342_v36  ;;  %v2159_v38 = vcombine.high %v342_v36, %v342_v36  ;;  %v2567_v39 = vld [vmem:[%s2951_s27 + $0x138] sm:$0xff]   ;;  %v2568_v40 = vld [vmem:[%s2951_s27 + $0x170] sm:$0xff]   ;;  %v2570_v42 = vld [vmem:[%s2951_s27 + $0x168] sm:$0xff]  }
  0x4f   : > { %2293 = vmatprep.subr.bf16.mxu1 %v2544_v14  ;;  %v2569_v41 = vld [vmem:[%s2951_s27 + $0x130] sm:$0xff]   ;;  %v2571_v43 = vld [vmem:[%s2951_s27 + $0x128] sm:$0xff]   ;;  %v2572_v44 = vld [vmem:[%s2951_s27 + $0x160] sm:$0xff]  }
  0x50   : > { %2272 = vmatpush3.bf16.msra.mxu0 %v2543_v13  ;;  %828 = vmatprep.mubr.bf16.mxu1 %v2159_v38  ;;  %v2573_v45 = vld [vmem:[%s2951_s27 + $0x120] sm:$0xff]   ;;  %v2574_v46 = vld [vmem:[%s2951_s27 + $0x158] sm:$0xff]   ;;  %v2576_v49 = vld [vmem:[%s2951_s27 + $0x150] sm:$0xff]  }
  0x51   : > { %2273 = vmatprep.subr.bf16.mxu0 %v2546_v16  ;;  %v2575_v47 = vld [vmem:[%s2951_s27 + $0x118] sm:$0xff]   ;;  %v343_v48 = vld [vmem:[%s3206_s0 + $0x10] sm:$0xff]  ;;  %v2577_v51 = vld [vmem:[%s2951_s27 + $0x110] sm:$0xff]  }
  0x52   : > { %2294 = vmatpush3.bf16.msra.mxu1 %v2545_v15  ;;  %v2161_v50 = vcombine.high %v343_v48, %v343_v48  ;;  %v2578_v52 = vld [vmem:[%s2951_s27 + $0x148] sm:$0xff]   ;;  %v2580_v54 = vld [vmem:[%s2951_s27 + $0x140] sm:$0xff]   ;;  %v2160_v56 = vcombine.low %v343_v48, %v343_v48  ;;  %v2155_v2 = vld [vmem:[%s339_s20] ss:$0 sm:$0xff] }
  0x53   : > { %2295 = vmatprep.subr.bf16.mxu1 %v2548_v18  ;;  %v2579_v53 = vld [vmem:[%s2951_s27 + $0x108] sm:$0xff]   ;;  %v2581_v55 = vld [vmem:[%s2951_s27 + $0x100] sm:$0xff]  }
  0x54   : > { %2274 = vmatpush3.bf16.msra.mxu0 %v2547_v17 }
  0x55   : > { %2275 = vmatprep.subr.bf16.mxu0 %v2550_v20 }
  0x56   : > { %2296 = vmatpush3.bf16.msra.mxu1 %v2549_v19 }
  0x57   : > { %2297 = vmatprep.subr.bf16.mxu1 %v2552_v22 }
  0x58   : > { %2276 = vmatpush3.bf16.msra.mxu0 %v2551_v21 }
  0x59   : > { %2277 = vmatprep.subr.bf16.mxu0 %v2554_v24 }
  0x5a   : > { %2298 = vmatpush3.bf16.msra.mxu1 %v2553_v23 }
  0x5b   : > { %2299 = vmatprep.subr.bf16.mxu1 %v2556_v26 }
  0x5c   : > { %2278 = vmatpush3.bf16.msra.mxu0 %v2555_v25 }
  0x5d   : > { %2279 = vmatprep.subr.bf16.mxu0 %v2558_v28 }
  0x5e   : > { %2300 = vmatpush3.bf16.msra.mxu1 %v2557_v27 }
  0x5f   : > { %2301 = vmatprep.subr.bf16.mxu1 %v2560_v30 }
  0x60   : > { %2280 = vmatpush3.bf16.msra.mxu0 %v2559_v29 }
  0x61   : > { %2309 = vmatprep.subr.bf16.mxu0 %v2564_v35 }
  0x62   : > { %2302 = vmatpush3.bf16.msra.mxu1 %v2563_v34 }
  0x63   : > { %789 = vmatmul.mubr.bf16.vlgmr.msra.gmra.mxu0 %v2156_v32 }
  0x64   : > { %2310 = vmatpush3.bf16.msra.mxu0 %v2567_v39  ;;  %868 = vmatprep.mubr.bf16.mxu0 %v2161_v50 }
  0x65   : > { %829 = vmatmul.mubr.bf16.vlgmr.msra.gmra.mxu1 %v2158_v37  ;;  %2311 = vmatprep.subr.bf16.mxu0 %v2568_v40 }
  0x68   : > { %2312 = vmatpush3.bf16.msra.mxu0 %v2569_v41 }
  0x69   : > { %2313 = vmatprep.subr.bf16.mxu0 %v2570_v42 }
  0x6c   : > { %2314 = vmatpush3.bf16.msra.mxu0 %v2571_v43 }
  0x6d   : > { %2315 = vmatprep.subr.bf16.mxu0 %v2572_v44 }
  0x70   : > { %2316 = vmatpush3.bf16.msra.mxu0 %v2573_v45 }
  0x71   : > { %2317 = vmatprep.subr.bf16.mxu0 %v2574_v46 }
  0x74   : > { %2318 = vmatpush3.bf16.msra.mxu0 %v2575_v47 }
  0x75   : > { %2319 = vmatprep.subr.bf16.mxu0 %v2576_v49 }
  0x78   : > { %2320 = vmatpush3.bf16.msra.mxu0 %v2577_v51 }
  0x79   : > { %2321 = vmatprep.subr.bf16.mxu0 %v2578_v52 }
  0x7c   : > { %2322 = vmatpush3.bf16.msra.mxu0 %v2579_v53 }
  0x7d   : > { %2323 = vmatprep.subr.bf16.mxu0 %v2580_v54 }
  0x80   : > { %2324 = vmatpush3.bf16.msra.mxu0 %v2581_v55 }
  0x83   : > { %869 = vmatmul.mubr.bf16.vlgmr.msra.gmra.mxu0 %v2160_v56 }
 0x123   : > { %v2281_v57 = vpop.f32.mrf.mxu0 }
 0x125   : > { %v2282_v58 = vpop.f32.mrf.mxu0  ;;  %v2303_v59 = vpop.f32.mrf.mxu1 }
 0x126   : > { %v2283_v1 = vadd.f32 %v2282_v58, %v2281_v57 }
 0x127   : > { %v2284_v60 = vpop.f32.mrf.mxu0  ;;  %v2304_v61 = vpop.f32.mrf.mxu1 }
 0x128   : > { %v791_v3 = vadd.f32 %v2283_v1, %v2155_v2  ;;  %v2305_v4 = vadd.f32 %v2304_v61, %v2303_v59 }
 0x129   : > { %v2285_v62 = vpop.f32.mrf.mxu0  ;;  %v2306_v63 = vpop.f32.mrf.mxu1 }
 0x12a   : > { %v831_v7 = vadd.f32 %v2305_v4, %v791_v3 }
 0x12b   : > { %v2307_v0 = vpop.f32.mrf.mxu1 }
 0x143   : > { %v2325_v5 = vpop.f32.mrf.mxu0 }
 0x145   : > { %v2326_v6 = vpop.f32.mrf.mxu0 }
 0x146   : > { %v2327_v8 = vadd.f32 %v2326_v6, %v2325_v5  ;;  %880 = sbr.rel (%p3228_p13) target bundleno = 333 (0x14d), region = 64 }
 0x147   : > { %v2328_v9 = vpop.f32.mrf.mxu0 }
 0x148   : > { %v871_v10 = vadd.f32 %v2327_v8, %v831_v7 }
 0x149   : > { %v2329_v11 = vpop.f32.mrf.mxu0 }
 0x14a   : > { %v876_v12 = vmax.f32 %v871_v10, 0.0 }
 0x14c   : > { %881 = vst [vmem:[#allocation2] sm:$0xff] %v876_v12 }
 0x14d PF: > { %p2211_p1 = scmp.ne.s32.totalorder %s2858_s9, 1 }
 0x14e   : > { %s2789_s21 = smov (!%p2211_p1), 96   ;;  %s2790_s27 = smov (!%p2211_p1), 16  }
 0x14f   : > { %885 = sbr.rel (%p2211_p1) target bundleno = 6723 (0x1a43), region = 68  ;;  %s2791_s15 = smov (!%p2211_p1), 32  }
 0x150   : > { %s2792_s16 = smov (!%p2211_p1), 80  }
 0x154   : > { %v2584_v13 = vld [vmem:[#allocation6 + $0x78] sm:$0xff]   ;;  %v890_v14 = vpack.c.bf16 %v876_v12, %v876_v12  ;;  %v2787_v16 = vmov 0.0   ;;  %v2586_v17 = vld [vmem:[#allocation6 + $0x70] sm:$0xff]   ;;  %v2588_v19 = vld [vmem:[#allocation6 + $0x68] sm:$0xff]   ;;  %vm2788_vm0 = vmmov 0   ;;  %vm1181_vm1 = vcmask 130048  }
 0x155   : > { %v2585_v15 = vld [vmem:[#allocation6 + $0x38] sm:$0xff]   ;;  %2386 = vmatprep.subr.bf16.mxu1 %v2787_v16  ;;  %2331 = vmatprep.subr.bf16.mxu0 %v2584_v13  ;;  %v2587_v18 = vld [vmem:[#allocation6 + $0x30] sm:$0xff]   ;;  %v2589_v20 = vld [vmem:[#allocation6 + $0x28] sm:$0xff]   ;;  %vm2036_vm2 = vcmask 1040384   ;;  %vm2038_vm3 = vcmask 1041408   ;;  %vm2040_vm4 = vcmask 1042432  }
 0x156   : > { %1058 = vmatprep.mubr.bf16.mxu0 %v890_v14  ;;  %2332 = vmatpush3.bf16.msra.mxu0 %v2585_v15  ;;  %v2590_v21 = vld [vmem:[#allocation6 + $0x60] sm:$0xff]   ;;  %v2592_v23 = vld [vmem:[#allocation6 + $0x58] sm:$0xff]   ;;  %v2594_v25 = vld [vmem:[#allocation6 + $0x50] sm:$0xff]   ;;  %vm2042_vm5 = vcmask 1043456   ;;  %vm2044_vm6 = vcmask 1044480   ;;  %vm2046_vm7 = vcmask 1045504  }
 0x157   : > { %2333 = vmatprep.subr.bf16.mxu0 %v2586_v17  ;;  %v2591_v22 = vld [vmem:[#allocation6 + $0x20] sm:$0xff]   ;;  %v2593_v24 = vld [vmem:[#allocation6 + $0x18] sm:$0xff]   ;;  %v2600_v26 = vld [vmem:[%s3211_s5 + $0x38] sm:$0xff]   ;;  %2402 = vmatprep.mubr.msk.bf16.mxu1 %vm2788_vm0, %v2787_v16  ;;  %vm2048_vm8 = vcmask 1046528   ;;  %vm2050_vm9 = vcmask 523648  }
 0x158   : > { %v2595_v27 = vld [vmem:[#allocation6 + $0x10] sm:$0xff]   ;;  %2387 = vmatpush3.bf16.msra.mxu1 %v2600_v26  ;;  %v2601_v28 = vld [vmem:[%s3211_s5 + $0x30] sm:$0xff]   ;;  %v2596_v29 = vld [vmem:[#allocation6 + $0x48] sm:$0xff]  }
 0x159   : > { %2388 = vmatprep.subr.bf16.mxu1 %v2787_v16  ;;  %v2597_v30 = vld [vmem:[#allocation6 + $0x8] sm:$0xff]   ;;  %v2602_v31 = vld [vmem:[%s3211_s5 + $0x28] sm:$0xff]   ;;  %v2598_v32 = vld [vmem:[#allocation6 + $0x40] sm:$0xff]  }
 0x15a   : > { %2334 = vmatpush3.bf16.msra.mxu0 %v2587_v18  ;;  %v2599_v33 = vld [vmem:[#allocation6] sm:$0xff]   ;;  %v887_v34 = vld [vmem:[#allocation2] sm:$0xff]  ;;  %v2604_v37 = vld [vmem:[%s3211_s5 + $0x18] sm:$0xff]  }
 0x15b   : > { %2335 = vmatprep.subr.bf16.mxu0 %v2588_v19  ;;  %v2603_v35 = vld [vmem:[%s3211_s5 + $0x20] sm:$0xff]   ;;  %v889_v36 = vpack.c.bf16 %v887_v34, %v887_v34  ;;  %v2605_v38 = vld [vmem:[%s3211_s5 + $0x10] sm:$0xff]   ;;  %v2606_v39 = vld [vmem:[%s3211_s5 + $0x8] sm:$0xff]  }
 0x15c   : > { %2389 = vmatpush3.bf16.msra.mxu1 %v2601_v28  ;;  %v2607_v40 = vld [vmem:[%s3211_s5] sm:$0xff]   ;;  %v3062_v41 = vld [vmem:[%s3213_s7 + $0x8] sm:$0xff] }
 0x15d   : > { %2390 = vmatprep.subr.bf16.mxu1 %v2787_v16  ;;  %v3069_v42 = vld [vmem:[%s3213_s7] sm:$0xff] }
 0x15e   : > { %2336 = vmatpush3.bf16.msra.mxu0 %v2589_v20  ;;  %v2212_v44 = vld [vmem:[%s3210_s4] ss:$0 sm:$0xff] }
 0x15f   : > { %2337 = vmatprep.subr.bf16.mxu0 %v2590_v21  ;;  %v2229_v54 = vld [vmem:[%s3212_s6] ss:$0 sm:$0xff] }
 0x160   : > { %2391 = vmatpush3.bf16.msra.mxu1 %v2602_v31 }
 0x161   : > { %2392 = vmatprep.subr.bf16.mxu1 %v2787_v16 }
 0x162   : > { %2338 = vmatpush3.bf16.msra.mxu0 %v2591_v22 }
 0x163   : > { %2339 = vmatprep.subr.bf16.mxu0 %v2592_v23 }
 0x164   : > { %2393 = vmatpush3.bf16.msra.mxu1 %v2603_v35 }
 0x165   : > { %2394 = vmatprep.subr.bf16.mxu1 %v2787_v16 }
 0x166   : > { %2340 = vmatpush3.bf16.msra.mxu0 %v2593_v24 }
 0x167   : > { %2341 = vmatprep.subr.bf16.mxu0 %v2594_v25 }
 0x168   : > { %2395 = vmatpush3.bf16.msra.mxu1 %v2604_v37 }
 0x169   : > { %2396 = vmatprep.subr.bf16.mxu1 %v2787_v16 }
 0x16a   : > { %2342 = vmatpush3.bf16.msra.mxu0 %v2595_v27 }
 0x16b   : > { %2343 = vmatprep.subr.bf16.mxu0 %v2596_v29 }
 0x16c   : > { %2397 = vmatpush3.bf16.msra.mxu1 %v2605_v38 }
 0x16d   : > { %2398 = vmatprep.subr.bf16.mxu1 %v2787_v16 }
 0x16e   : > { %2344 = vmatpush3.bf16.msra.mxu0 %v2597_v30 }
 0x16f   : > { %2345 = vmatprep.subr.bf16.mxu0 %v2598_v32 }
 0x170   : > { %2399 = vmatpush3.bf16.msra.mxu1 %v2606_v39 }
 0x171   : > { %2400 = vmatprep.subr.bf16.mxu1 %v2787_v16 }
 0x172   : > { %2346 = vmatpush3.bf16.msra.mxu0 %v2599_v33 }
 0x173   : > { %2406 = vmatprep.subr.mxu0 %v2787_v16 }
 0x174   : > { %2401 = vmatpush3.bf16.msra.mxu1 %v2607_v40 }
 0x175   : > { %1059 = vmatmul.mubr.bf16.vlgmr.msra.gmra.mxu0 %v889_v36  ;;  %2413 = vmatprep.subr.mxu1 %v2787_v16 }
 0x176   : > { %2407 = vmatpush3.msra.mxu0 %v3062_v41  ;;  %2410 = vmatprep.mubr.msk.f32.mxu0 %vm2788_vm0, %v2787_v16 }
 0x177   : > { %2408 = vmatprep.subr.mxu0 %v2787_v16 }
 0x178   : > { %2409 = vmatpush3.msra.mxu0 %v3069_v42 }
 0x179   : > { %2420 = vmatprep.subr.mxu0 %v2787_v16 }
 0x17d   : > { %2411 = vmatmul.mubr.f32.vlgmr.msra.gmra.mxu0 %v2787_v16 }
 0x17e   : > { %2421 = vmatpush3.msra.mxu0 %v3062_v41  ;;  %2424 = vmatprep.mubr.msk.f32.mxu0 %vm2788_vm0, %v2787_v16 }
 0x17f   : > { %2422 = vmatprep.subr.mxu0 %v2787_v16 }
 0x180   : > { %2423 = vmatpush3.msra.mxu0 %v3069_v42 }
 0x181   : > { %2434 = vmatprep.subr.mxu0 %v2787_v16 }
 0x235   : > { %v2347_v43 = vpop.f32.mrf.mxu0 }
 0x237   : > { %v2348_v45 = vpop.f32.mrf.mxu0 }
 0x238   : > { %v2349_v46 = vadd.f32 %v2348_v45, %v2347_v43 }
 0x239   : > { %v2350_v47 = vpop.f32.mrf.mxu0 }
 0x23a   : > { %v1061_v48 = vadd.f32 %v2349_v46, %v2212_v44 }
 0x23b   : > { %v2351_v49 = vpop.f32.mrf.mxu0 }
 0x23c   : > { %v1066_v50 = vmax.f32 %v1061_v48, 0.0 }
 0x23d   : > { %v1251_v52 = vpop.f32.mrf.mxu0 }
 0x23e   : > { %v1067_v51 = vpack.c.bf16 %v1066_v50, %v1066_v50 }
 0x23f   : > { %v2412_v53 = vpop.f32.mrf.mxu0 }
 0x240   : > { %2403 = vmatmul.mubr.bf16.vlgmr.msra.gmra.mxu1 %v1067_v51 }
 0x241   : > { %2414 = vmatpush3.msra.mxu1 %v3062_v41  ;;  %2417 = vmatprep.mubr.msk.f32.mxu1 %vm2788_vm0, %v2787_v16 }
 0x242   : > { %2415 = vmatprep.subr.mxu1 %v2787_v16 }
 0x243   : > { %2416 = vmatpush3.msra.mxu1 %v3069_v42 }
 0x244   : > { %2427 = vmatprep.subr.mxu1 %v2787_v16 }
 0x300   : > { %v1173_v55 = vpop.f32.mrf.mxu1 }
 0x301   : > { %v3097_v56 = vadd.f32 %v2229_v54, %v1173_v55 }
 0x302   : > { %v2404_v57 = vpop.f32.mrf.mxu1 }
 0x303   : > { %v1255_v58 = vadd.f32 %v1251_v52, %v3097_v56 }
 0x304   : > { %v1176_v59 = vpop.f32.mrf.mxu1 }
 0x305   : > { %v2238_v60 = vmul.f32 -1.442695, %v1255_v58 }
 0x306   : > { %v2405_v61 = vpop.f32.mrf.mxu1 }
 0x307   : > { %2608 = vpow2.f32 %v2238_v60 }
 0x314   : > { %v2609_v62 = vpop.eup %2608 }
 0x315   : > { %v1259_v63 = vadd.f32 1.0, %v2609_v62 }
 0x317   : > { %2610 = vrcp.f32 %v1259_v63 }
 0x324   : > { %v2611_v0 = vpop.eup %2610 }
 0x325   : > { %v1262_v1 = vmul.f32 2.0, %v2611_v0  ;;  %v1264_v5 = vmul.f32 0.0, %v2611_v0 }
 0x327   : > { %v2239_v2 = vadd.f32 -1.0, %v1262_v1 }
 0x329   : > { %1266 = vrot.lane.b32.xlu0 %v2239_v2, %s2789_s21 }
 0x39b   : > { %v1267_v3 = vpop.permute.xlu0 %1266 }
 0x39c   : > { %v1269_v4 = vmul.f32 %v2611_v0, %v1267_v3 }
 0x39e   : > { %1271 = vrot.lane.b32.xlu0 %v1269_v4, %s2790_s27 }
 0x410   : > { %v1272_v6 = vpop.permute.xlu0 %1271 }
 0x411   : > { %v1274_v7 = vadd.f32 %v1272_v6, %v1264_v5 }
 0x413   : > { %2612 = vtanh.f32 %v1274_v7  ;;  %v1369_v25 = vrot.slane %v1274_v7, 7 }
 0x420   : > { %v2613_v8 = vpop.eup %2612 }
 0x421   : > { %1277 = vrot.lane.b32.xlu1 %v2613_v8, %s2791_s15 }
 0x493   : > { %v1278_v9 = vpop.permute.xlu1 %1277 }
 0x494   : > { %v3103_v10 = vmul.f32 %v2611_v0, %v1278_v9 }
 0x496   : > { %1282 = vrot.lane.b32.xlu1 %v3103_v10, %s2792_s16 }
 0x508   : > { %v1283_v11 = vpop.permute.xlu1 %1282 }
 0x509   : > { %2418 = vmatmul.mubr.msk.f32.vlgmr.msra.gmra.mxu1 %vm1181_vm1, %v1283_v11 }
 0x50a   : > { %2428 = vmatpush3.msra.mxu1 %v3062_v41  ;;  %2431 = vmatprep.mubr.msk.f32.mxu1 %vm2788_vm0, %v2787_v16 }
 0x50b   : > { %2429 = vmatprep.subr.mxu1 %v2787_v16 }
 0x50c   : > { %2430 = vmatpush3.msra.mxu1 %v3069_v42 }
 0x50d   : > { %2441 = vmatprep.subr.mxu1 %v2787_v16 }
 0x5c9   : > { %v1352_v12 = vpop.f32.mrf.mxu1 }
 0x5ca   : > { %v1357_v13 = vrot.slane %v1352_v12, 7 }
 0x5cb   : > { %v2419_v14 = vpop.f32.mrf.mxu1 }
 0x5cc   : > { %v1359_v15 = vadd.f32 %v1357_v13, %v3097_v56 }
 0x5ce   : > { %v2241_v17 = vmul.f32 -1.442695, %v1359_v15 }
 0x5d0   : > { %2614 = vpow2.f32 %v2241_v17 }
 0x5dd   : > { %v2615_v18 = vpop.eup %2614 }
 0x5de   : > { %v1363_v19 = vadd.f32 1.0, %v2615_v18 }
 0x5e0   : > { %2616 = vrcp.f32 %v1363_v19 }
 0x5ed   : > { %v2617_v20 = vpop.eup %2616 }
 0x5ee   : > { %v1366_v21 = vmul.f32 2.0, %v2617_v20  ;;  %v1371_v26 = vmul.f32 %v2617_v20, %v1369_v25 }
 0x5f0   : > { %v2242_v22 = vadd.f32 -1.0, %v1366_v21 }
 0x5f2   : > { %1373 = vrot.lane.b32.xlu0 %v2242_v22, %s2789_s21 }
 0x664   : > { %v1374_v23 = vpop.permute.xlu0 %1373 }
 0x665   : > { %v1376_v24 = vmul.f32 %v2617_v20, %v1374_v23 }
 0x667   : > { %1378 = vrot.lane.b32.xlu1 %v1376_v24, %s2790_s27 }
 0x6d9   : > { %v1379_v27 = vpop.permute.xlu1 %1378 }
 0x6da   : > { %v1381_v28 = vadd.f32 %v1379_v27, %v1371_v26 }
 0x6dc   : > { %2618 = vtanh.f32 %v1381_v28  ;;  %v1477_v48 = vrot.slane %v1381_v28, 7 }
 0x6e9   : > { %v2619_v29 = vpop.eup %2618 }
 0x6ea   : > { %1384 = vrot.lane.b32.xlu0 %v2619_v29, %s2791_s15 }
 0x75c   : > { %v1385_v30 = vpop.permute.xlu0 %1384 }
 0x75d   : > { %v1387_v31 = vmul.f32 %v2617_v20, %v1385_v30 }
 0x75f   : > { %v1389_v32 = vrot.slane %v1387_v31, 1  ;;  %v2037_v55 = vsel %vm2036_vm2, %v3103_v10, %v1387_v31 }
 0x761   : > { %1390 = vrot.lane.b32.xlu1 %v1389_v32, %s2792_s16 }
 0x7d3   : > { %v1391_v33 = vpop.permute.xlu1 %1390 }
 0x7d4   : > { %2425 = vmatmul.mubr.msk.f32.vlgmr.msra.gmra.mxu0 %vm1181_vm1, %v1391_v33 }
 0x7d5   : > { %2435 = vmatpush3.msra.mxu0 %v3062_v41  ;;  %2438 = vmatprep.mubr.msk.f32.mxu0 %vm2788_vm0, %v2787_v16 }
 0x7d6   : > { %2436 = vmatprep.subr.mxu0 %v2787_v16 }
 0x7d7   : > { %2437 = vmatpush3.msra.mxu0 %v3069_v42 }
 0x7d8   : > { %2448 = vmatprep.subr.mxu0 %v2787_v16 }
 0x894   : > { %v1460_v34 = vpop.f32.mrf.mxu0 }
 0x895   : > { %v1465_v35 = vrot.slane %v1460_v34, 6 }
 0x896   : > { %v2426_v36 = vpop.f32.mrf.mxu0 }
 0x897   : > { %v1467_v37 = vadd.f32 %v1465_v35, %v3097_v56 }
 0x899   : > { %v2244_v38 = vmul.f32 -1.442695, %v1467_v37 }
 0x89b   : > { %2620 = vpow2.f32 %v2244_v38 }
 0x8a8   : > { %v2621_v39 = vpop.eup %2620 }
 0x8a9   : > { %v1471_v40 = vadd.f32 1.0, %v2621_v39 }
 0x8ab   : > { %2622 = vrcp.f32 %v1471_v40 }
 0x8b8   : > { %v2623_v43 = vpop.eup %2622 }
 0x8b9   : > { %v1474_v44 = vmul.f32 2.0, %v2623_v43  ;;  %v1479_v49 = vmul.f32 %v2623_v43, %v1477_v48 }
 0x8bb   : > { %v2245_v45 = vadd.f32 -1.0, %v1474_v44 }
 0x8bd   : > { %1481 = vrot.lane.b32.xlu0 %v2245_v45, %s2789_s21 }
 0x92f   : > { %v1482_v46 = vpop.permute.xlu0 %1481 }
 0x930   : > { %v1484_v47 = vmul.f32 %v2623_v43, %v1482_v46 }
 0x932   : > { %1486 = vrot.lane.b32.xlu1 %v1484_v47, %s2790_s27 }
 0x9a4   : > { %v1487_v50 = vpop.permute.xlu1 %1486 }
 0x9a5   : > { %v1489_v51 = vadd.f32 %v1487_v50, %v1479_v49 }
 0x9a7   : > { %2624 = vtanh.f32 %v1489_v51  ;;  %v1585_v8 = vrot.slane %v1489_v51, 7 }
 0x9b4   : > { %v2625_v52 = vpop.eup %2624 }
 0x9b5   : > { %1492 = vrot.lane.b32.xlu0 %v2625_v52, %s2791_s15 }
 0xa27   : > { %v1493_v53 = vpop.permute.xlu0 %1492 }
 0xa28   : > { %v1495_v54 = vmul.f32 %v2623_v43, %v1493_v53 }
 0xa2a   : > { %v1497_v57 = vrot.slane %v1495_v54, 2  ;;  %v2039_v58 = vsel %vm2038_vm3, %v2037_v55, %v1495_v54 }
 0xa2c   : > { %1498 = vrot.lane.b32.xlu1 %v1497_v57, %s2792_s16 }
 0xa9e   : > { %v1499_v59 = vpop.permute.xlu1 %1498 }
 0xa9f   : > { %2432 = vmatmul.mubr.msk.f32.vlgmr.msra.gmra.mxu1 %vm1181_vm1, %v1499_v59 }
 0xaa0   : > { %2442 = vmatpush3.msra.mxu1 %v3062_v41  ;;  %2445 = vmatprep.mubr.msk.f32.mxu1 %vm2788_vm0, %v2787_v16 }
 0xaa1   : > { %2443 = vmatprep.subr.mxu1 %v2787_v16 }
 0xaa2   : > { %2444 = vmatpush3.msra.mxu1 %v3069_v42 }
 0xaa3   : > { %2455 = vmatprep.subr.mxu1 %v2787_v16 }
 0xb5f   : > { %v1568_v60 = vpop.f32.mrf.mxu1 }
 0xb60   : > { %v1573_v61 = vrot.slane %v1568_v60, 5 }
 0xb61   : > { %v2433_v62 = vpop.f32.mrf.mxu1 }
 0xb62   : > { %v1575_v63 = vadd.f32 %v1573_v61, %v3097_v56 }
 0xb64   : > { %v2247_v0 = vmul.f32 -1.442695, %v1575_v63 }
 0xb66   : > { %2626 = vpow2.f32 %v2247_v0 }
 0xb73   : > { %v2627_v1 = vpop.eup %2626 }
 0xb74   : > { %v1579_v2 = vadd.f32 1.0, %v2627_v1 }
 0xb76   : > { %2628 = vrcp.f32 %v1579_v2 }
 0xb83   : > { %v2629_v3 = vpop.eup %2628 }
 0xb84   : > { %v1582_v4 = vmul.f32 2.0, %v2629_v3  ;;  %v1587_v9 = vmul.f32 %v2629_v3, %v1585_v8 }
 0xb86   : > { %v2248_v5 = vadd.f32 -1.0, %v1582_v4 }
 0xb88   : > { %1589 = vrot.lane.b32.xlu0 %v2248_v5, %s2789_s21 }
 0xbfa   : > { %v1590_v6 = vpop.permute.xlu0 %1589 }
 0xbfb   : > { %v1592_v7 = vmul.f32 %v2629_v3, %v1590_v6 }
 0xbfd   : > { %1594 = vrot.lane.b32.xlu1 %v1592_v7, %s2790_s27 }
 0xc6f   : > { %v1595_v10 = vpop.permute.xlu1 %1594 }
 0xc70   : > { %v1597_v11 = vadd.f32 %v1595_v10, %v1587_v9 }
 0xc72   : > { %2630 = vtanh.f32 %v1597_v11  ;;  %v1693_v31 = vrot.slane %v1597_v11, 7 }
 0xc7f   : > { %v2631_v12 = vpop.eup %2630 }
 0xc80   : > { %1600 = vrot.lane.b32.xlu0 %v2631_v12, %s2791_s15 }
 0xcf2   : > { %v1601_v13 = vpop.permute.xlu0 %1600 }
 0xcf3   : > { %v1603_v14 = vmul.f32 %v2629_v3, %v1601_v13 }
 0xcf5   : > { %v1605_v15 = vrot.slane %v1603_v14, 3  ;;  %v2041_v17 = vsel %vm2040_vm4, %v2039_v58, %v1603_v14 }
 0xcf7   : > { %1606 = vrot.lane.b32.xlu1 %v1605_v15, %s2792_s16 }
 0xd69   : > { %v1607_v18 = vpop.permute.xlu1 %1606 }
 0xd6a   : > { %2439 = vmatmul.mubr.msk.f32.vlgmr.msra.gmra.mxu0 %vm1181_vm1, %v1607_v18 }
 0xd6b   : > { %2449 = vmatpush3.msra.mxu0 %v3062_v41  ;;  %2452 = vmatprep.mubr.msk.f32.mxu0 %vm2788_vm0, %v2787_v16 }
 0xd6c   : > { %2450 = vmatprep.subr.mxu0 %v2787_v16 }
 0xd6d   : > { %2451 = vmatpush3.msra.mxu0 %v3069_v42 }
 0xe2a   : > { %v1676_v19 = vpop.f32.mrf.mxu0 }
 0xe2b   : > { %v1681_v20 = vrot.slane %v1676_v19, 4 }
 0xe2c   : > { %v2440_v21 = vpop.f32.mrf.mxu0 }
 0xe2d   : > { %v1683_v22 = vadd.f32 %v1681_v20, %v3097_v56 }
 0xe2f   : > { %v2250_v23 = vmul.f32 -1.442695, %v1683_v22 }
 0xe31   : > { %2632 = vpow2.f32 %v2250_v23 }
 0xe3e   : > { %v2633_v24 = vpop.eup %2632 }
 0xe3f   : > { %v1687_v25 = vadd.f32 1.0, %v2633_v24 }
 0xe41   : > { %2634 = vrcp.f32 %v1687_v25 }
 0xe4e   : > { %v2635_v26 = vpop.eup %2634 }
 0xe4f   : > { %v1690_v27 = vmul.f32 2.0, %v2635_v26  ;;  %v1695_v32 = vmul.f32 %v2635_v26, %v1693_v31 }
 0xe51   : > { %v2251_v28 = vadd.f32 -1.0, %v1690_v27 }
 0xe53   : > { %1697 = vrot.lane.b32.xlu0 %v2251_v28, %s2789_s21 }
 0xec5   : > { %v1698_v29 = vpop.permute.xlu0 %1697 }
 0xec6   : > { %v1700_v30 = vmul.f32 %v2635_v26, %v1698_v29 }
 0xec8   : > { %1702 = vrot.lane.b32.xlu1 %v1700_v30, %s2790_s27 }
 0xf3a   : > { %v1703_v33 = vpop.permute.xlu1 %1702 }
 0xf3b   : > { %v1705_v34 = vadd.f32 %v1703_v33, %v1695_v32 }
 0xf3d   : > { %2636 = vtanh.f32 %v1705_v34 }
 0xf4a   : > { %v2637_v35 = vpop.eup %2636 }
 0xf4b   : > { %1708 = vrot.lane.b32.xlu0 %v2637_v35, %s2791_s15 }
 0xfbd   : > { %v1709_v36 = vpop.permute.xlu0 %1708 }
 0xfbe   : > { %v1711_v37 = vmul.f32 %v2635_v26, %v1709_v36 }
 0xfc0   : > { %v1713_v38 = vrot.slane %v1711_v37, 4  ;;  %v2043_v39 = vsel %vm2042_vm5, %v2041_v17, %v1711_v37 }
 0xfc2   : > { %1714 = vrot.lane.b32.xlu1 %v1713_v38, %s2792_s16 }
0x1034   : > { %v1715_v40 = vpop.permute.xlu1 %1714 }
0x1035   : > { %2446 = vmatmul.mubr.msk.f32.vlgmr.msra.gmra.mxu1 %vm1181_vm1, %v1715_v40 }
0x1036   : > { %2456 = vmatpush3.msra.mxu1 %v3062_v41  ;;  %2459 = vmatprep.mubr.msk.f32.mxu1 %vm2788_vm0, %v2787_v16 }
0x1037   : > { %2457 = vmatprep.subr.mxu1 %v2787_v16  ;;  %v1801_v16 = vrot.slane %v1705_v34, 7 }
0x1038   : > { %2458 = vmatpush3.msra.mxu1 %v3069_v42 }
0x10f5   : > { %v1784_v43 = vpop.f32.mrf.mxu1 }
0x10f6   : > { %v1789_v44 = vrot.slane %v1784_v43, 3 }
0x10f7   : > { %v2447_v45 = vpop.f32.mrf.mxu1 }
0x10f8   : > { %v1791_v46 = vadd.f32 %v1789_v44, %v3097_v56 }
0x10fa   : > { %v2253_v47 = vmul.f32 -1.442695, %v1791_v46 }
0x10fc   : > { %2638 = vpow2.f32 %v2253_v47 }
0x1109   : > { %v2639_v48 = vpop.eup %2638 }
0x110a   : > { %v1795_v49 = vadd.f32 1.0, %v2639_v48 }
0x110c   : > { %2640 = vrcp.f32 %v1795_v49 }
0x1119   : > { %v2641_v50 = vpop.eup %2640 }
0x111a   : > { %v1798_v51 = vmul.f32 2.0, %v2641_v50  ;;  %v1803_v42 = vmul.f32 %v2641_v50, %v1801_v16 }
0x111c   : > { %v2254_v41 = vadd.f32 -1.0, %v1798_v51 }
0x111e   : > { %1805 = vrot.lane.b32.xlu0 %v2254_v41, %s2789_s21 }
0x1190   : > { %v1806_v52 = vpop.permute.xlu0 %1805 }
0x1191   : > { %v1808_v53 = vmul.f32 %v2641_v50, %v1806_v52 }
0x1193   : > { %1810 = vrot.lane.b32.xlu1 %v1808_v53, %s2790_s27 }
0x1205   : > { %v1811_v54 = vpop.permute.xlu1 %1810 }
0x1206   : > { %v1813_v55 = vadd.f32 %v1811_v54, %v1803_v42 }
0x1208   : > { %2642 = vtanh.f32 %v1813_v55  ;;  %v1909_v11 = vrot.slane %v1813_v55, 7 }
0x1215   : > { %v2643_v57 = vpop.eup %2642 }
0x1216   : > { %1816 = vrot.lane.b32.xlu0 %v2643_v57, %s2791_s15 }
0x1288   : > { %v1817_v58 = vpop.permute.xlu0 %1816 }
0x1289   : > { %v1819_v59 = vmul.f32 %v2641_v50, %v1817_v58 }
0x128b   : > { %v1821_v60 = vrot.slane %v1819_v59, 5  ;;  %v2045_v61 = vsel %vm2044_vm6, %v2043_v39, %v1819_v59 }
0x128d   : > { %1822 = vrot.lane.b32.xlu1 %v1821_v60, %s2792_s16 }
0x12ff   : > { %v1823_v62 = vpop.permute.xlu1 %1822 }
0x1300   : > { %2453 = vmatmul.mubr.msk.f32.vlgmr.msra.gmra.mxu0 %vm1181_vm1, %v1823_v62 }
0x13c0   : > { %v1892_v63 = vpop.f32.mrf.mxu0 }
0x13c1   : > { %v1897_v0 = vrot.slane %v1892_v63, 2 }
0x13c2   : > { %v2454_v1 = vpop.f32.mrf.mxu0 }
0x13c3   : > { %v1899_v2 = vadd.f32 %v1897_v0, %v3097_v56 }
0x13c5   : > { %v2256_v3 = vmul.f32 -1.442695, %v1899_v2 }
0x13c7   : > { %2644 = vpow2.f32 %v2256_v3 }
0x13d4   : > { %v2645_v4 = vpop.eup %2644 }
0x13d5   : > { %v1903_v5 = vadd.f32 1.0, %v2645_v4 }
0x13d7   : > { %2646 = vrcp.f32 %v1903_v5 }
0x13e4   : > { %v2647_v6 = vpop.eup %2646 }
0x13e5   : > { %v1906_v7 = vmul.f32 2.0, %v2647_v6  ;;  %v1911_v12 = vmul.f32 %v2647_v6, %v1909_v11 }
0x13e7   : > { %v2257_v8 = vadd.f32 -1.0, %v1906_v7 }
0x13e9   : > { %1913 = vrot.lane.b32.xlu0 %v2257_v8, %s2789_s21 }
0x145b   : > { %v1914_v9 = vpop.permute.xlu0 %1913 }
0x145c   : > { %v1916_v10 = vmul.f32 %v2647_v6, %v1914_v9 }
0x145e   : > { %1918 = vrot.lane.b32.xlu1 %v1916_v10, %s2790_s27 }
0x14d0   : > { %v1919_v13 = vpop.permute.xlu1 %1918 }
0x14d1   : > { %v1921_v14 = vadd.f32 %v1919_v13, %v1911_v12 }
0x14d3   : > { %2648 = vtanh.f32 %v1921_v14  ;;  %v2017_v34 = vrot.slane %v1921_v14, 7 }
0x14e0   : > { %v2649_v15 = vpop.eup %2648 }
0x14e1   : > { %1924 = vrot.lane.b32.xlu0 %v2649_v15, %s2791_s15 }
0x1553   : > { %v1925_v17 = vpop.permute.xlu0 %1924 }
0x1554   : > { %v1927_v18 = vmul.f32 %v2647_v6, %v1925_v17 }
0x1556   : > { %v1929_v19 = vrot.slane %v1927_v18, 6  ;;  %v2047_v20 = vsel %vm2046_vm7, %v2045_v61, %v1927_v18 }
0x1558   : > { %1930 = vrot.lane.b32.xlu1 %v1929_v19, %s2792_s16 }
0x15ca   : > { %v1931_v21 = vpop.permute.xlu1 %1930 }
0x15cb   : > { %2460 = vmatmul.mubr.msk.f32.vlgmr.msra.gmra.mxu1 %vm1181_vm1, %v1931_v21 }
0x168b   : > { %v2000_v22 = vpop.f32.mrf.mxu1 }
0x168c   : > { %v2005_v23 = vrot.slane %v2000_v22, 1 }
0x168d   : > { %v2461_v24 = vpop.f32.mrf.mxu1 }
0x168e   : > { %v2007_v25 = vadd.f32 %v2005_v23, %v3097_v56 }
0x1690   : > { %v2259_v26 = vmul.f32 -1.442695, %v2007_v25 }
0x1692   : > { %2650 = vpow2.f32 %v2259_v26 }
0x169f   : > { %v2651_v27 = vpop.eup %2650 }
0x16a0   : > { %v2011_v28 = vadd.f32 1.0, %v2651_v27 }
0x16a2   : > { %2652 = vrcp.f32 %v2011_v28 }
0x16af   : > { %v2653_v29 = vpop.eup %2652 }
0x16b0   : > { %v2014_v30 = vmul.f32 2.0, %v2653_v29  ;;  %v2019_v35 = vmul.f32 %v2653_v29, %v2017_v34 }
0x16b2   : > { %v2260_v31 = vadd.f32 -1.0, %v2014_v30 }
0x16b4   : > { %2021 = vrot.lane.b32.xlu0 %v2260_v31, %s2789_s21 }
0x1726   : > { %v2022_v32 = vpop.permute.xlu0 %2021 }
0x1727   : > { %v2024_v33 = vmul.f32 %v2653_v29, %v2022_v32 }
0x1729   : > { %2026 = vrot.lane.b32.xlu1 %v2024_v33, %s2790_s27 }
0x179b   : > { %v2027_v36 = vpop.permute.xlu1 %2026 }
0x179c   : > { %v2029_v37 = vadd.f32 %v2027_v36, %v2019_v35 }
0x179e   : > { %2654 = vtanh.f32 %v2029_v37 }
0x17ab   : > { %v2655_v56 = vpop.eup %2654 }
0x17ac   : > { %2032 = vrot.lane.b32.xlu0 %v2655_v56, %s2791_s15 }
0x181e   : > { %v2033_v38 = vpop.permute.xlu0 %2032 }
0x181f   : > { %v2035_v39 = vmul.f32 %v2653_v29, %v2033_v38 }
0x1821   : > { %v2049_v40 = vsel %vm2048_vm8, %v2047_v20, %v2035_v39 }
0x1822   : > { %v2051_v43 = vsel %vm2050_vm9, %v2049_v40, -inf }
0x1823   : > { %2052 = vmax.xlane.f32.xlu1 %v2051_v43 }
0x18ac   : > { %v2053_v44 = vpop.xlane.xlu1 %2052 }
0x18ad   : > { %v2054_v45 = vsub.f32 %v2049_v40, %v2053_v44 }
0x18af   : > { %v2055_v46 = vmul.f32 1.442695, %v2054_v45 }
0x18b1   : > { %2656 = vpow2.f32 %v2055_v46 }
0x18be   : > { %v2657_v47 = vpop.eup %2656 }
0x18bf   : > { %2058 = vrot.lane.b32.xlu0 %v2657_v47, %s2792_s16 }
0x1931   : > { %v2059_v48 = vpop.permute.xlu0 %2058 }
0x1932   : > { %v2061_v49 = vsel %vm1181_vm1, %v2059_v48, 0.0 }
0x1933   : > { %2062 = vadd.xlane.f32.xlu0 %v2061_v49 }
0x19bc   : > { %v2063_v50 = vpop.xlane.xlu0 %2062 }
0x19bd   : > { %2658 = vlog2.f32 %v2063_v50 }
0x19ca   : > { %v2659_v51 = vpop.eup %2658 }
0x19cb   : > { %v2065_v41 = vmul.f32 0.6931472, %v2659_v51 }
0x19cd   : > { %v2066_v52 = vsub.f32 %v2054_v45, %v2065_v41 }
0x19cf   : > { %2068 = vrot.lane.b32.xlu1 %v2066_v52, %s2792_s16 }
0x1a41   : > { %v2069_v53 = vpop.permute.xlu1 %2068 }
0x1a42   : > { %2071 = vst.msk [vmem:[#allocation8] sm:$0xff] %vm1181_vm1, %v2069_v53 }
0x1a43 PF: > { %p2485_p2 = scmp.eq.s32.totalorder %s2858_s9, 1  ;;  %s2793_s22 = smov [#allocation8]  }
0x1a44   : > { %s2079_s24 = sshll.u32 %s2793_s22, 4  ;;  %s2080_s24 = int_to_ptr.vmem [resolvable:$true] %s2079_s24 }
0x1a45   : > { %s2714_s25 = scalar_lea.vmem %s2080_s24, 128  ;;  %p2721_p11 = scmp.lt.s32.totalorder %s2080_s24, %s2080_s24 }
0x1a46   : > { %p2715_p3 = scmp.ne.s32.totalorder %s2080_s24, %s2714_s25  ;;  %p2722_p4 = scmp.lt.s32.totalorder %s2714_s25, %s2714_s25 }
0x1a48   : > { %p2716_p6 = pnand %p2715_p3, %p2485_p2  ;;  %p2723_p9 = por %p2722_p4, %p2721_p11 }
0x1a4a   : > { %p2717_p7 = pneg %p2716_p6 }
0x1a4c   : > { %p2724_p5 = pnand %p2723_p9, %p2717_p7 }
0x1a4e   : > { %2727 = shalt.err (!%p2724_p5)
}
0x1a4f   : > { %2471 = dma.vmem_to_hbm [thread:$0]  (%p2485_p2), %s2080_s24, 128, %s3214_s8, [#allocation5]  }
0x1a50   : > { %2763 = dma.done.wait (%p2485_p2), [#allocation5], 128  }
0x1a51   : > { %2765 = vsyncadd (%p2485_p2), [#allocation5], 4294967168 }
0x1a52 PF: > { %s3229_s19 = sld [smem:[#allocation12_spill]]  ;;  %p20_p8 = scmp.ge.s32.totalorder %s2861_s10, 4  }
0x1a53   : > { %s3230_s27 = smov %s2772_s28  ;;  %s3231_s28 = smov %s2776_s29 }
0x1a54   : > { %s3233_s30 = smov %s2861_s10  ;;  %22 = sbr.rel (!%p20_p8) target bundleno = 5 (0x5), region = 104 }
0x1a58   : > { %s3232_s29 = smov %s3229_s19 }
0x1a59   :  { %2092 = vsyncpa [#allocation4], 1 }
0x1a5a   :  { %2094 = vsyncpa [#allocation4 + $0x1], 1 }
0x1a5b   :  { %2095 = vsyncpa [#allocation7], 1 }
0x1a5c   :  { %2096 = vsyncpa [#allocation5], 1 }
0x1a5d   :  { %2098 = vsyncpa [#allocation5 + $0x1], 1 }

</bundles_post_ra>
